<compile_context>
chip_gen: v7x
topology: tpu7x:2x2x1
jax: 0.10.0
libtpu: 0.0.40
codegen_flags: <defaults>
</compile_context>

<pallas_src>
import functools

import jax
import jax.numpy as jnp
from jax.experimental import pallas as pl
from jax.experimental.pallas import tpu as pltpu

# Model dims and lane-padded counterparts.
IN_DIM = 784            # flattened 28x28 image (native width, used directly)
HID_DIM = 400           # fc1 / fc3 hidden width
HID_PAD = 512           # 4 * 128
LAT_DIM = 20            # latent dim
LAT_PAD = 128           # one full lane group per head
LAB_PAD = 128           # one-hot label width padded to a lane group


def cvae_kernel(x_ref, c_ref, eps_ref,
                w1x_ref, wc_ref, b13_ref, w2_ref, b2_ref,
                w3z_ref, w4_ref, b4_ref, out_ref):
    tb = x_ref.shape[0]

    # ---- label conditioning rebuilt in-kernel from the int32 index ----
    # one-hot (tb, 128) bf16; rows >= label_dim of wc are zero so padding is exact.
    eq = jax.lax.broadcasted_iota(jnp.int32, (tb, LAB_PAD), 1) == c_ref[...]
    onehot = jnp.where(eq, 1.0, 0.0).astype(jnp.bfloat16)
    # cond[:, :512] = c @ W1c + b1 ; cond[:, 512:] = c @ W3c + b3
    cond = jnp.dot(onehot, wc_ref[...], preferred_element_type=jnp.float32) + b13_ref[...]
    cond1 = cond[:, :HID_PAD]
    cond3 = cond[:, HID_PAD:]

    # ---- encode: h1 = relu(x @ W1x + cond1) ----
    h1 = jnp.dot(x_ref[...], w1x_ref[...], preferred_element_type=jnp.float32) + cond1
    h1 = jnp.maximum(h1, 0.0)

    # ---- fused mu/logvar head: cols [0:128) = mu slot, [128:256) = logvar slot ----
    ml = jnp.dot(h1.astype(jnp.bfloat16), w2_ref[...],
                 preferred_element_type=jnp.float32) + b2_ref[...]
    mu = ml[:, :LAT_PAD]
    logvar = ml[:, LAT_PAD:]

    # ---- reparameterize (f32). Padded mu/logvar lanes are exactly 0; eps pad lanes are
    # harmless because the matching W3z rows are zero. ----
    z = mu + eps_ref[...] * jnp.exp(0.5 * logvar)

    # ---- decode: h3 = relu(z @ W3z + cond3) ; out = sigmoid(h3 @ W4 + b4) ----
    h3 = jnp.dot(z.astype(jnp.bfloat16), w3z_ref[...],
                 preferred_element_type=jnp.float32) + cond3
    h3 = jnp.maximum(h3, 0.0)

    logits = jnp.dot(h3.astype(jnp.bfloat16), w4_ref[...],
                     preferred_element_type=jnp.float32) + b4_ref[...]
    out_ref[...] = jax.nn.sigmoid(logits)


def _round_up(n, m):
    return (n + m - 1) // m * m


def _pad_to(a, shape):
    return jnp.pad(a, [(0, t - s) for s, t in zip(a.shape, shape)])


def init_params(key, label_dim=10, latent_dim=LAT_DIM):
    """Synthetic weights in torch-equivalent layout: W as (in, out), b as (1, out)."""
    ks = jax.random.split(key, 5)

    def lin(k, fan_in, fan_out):
        kw, kb = jax.random.split(k)
        w = jax.random.normal(kw, (fan_in, fan_out), jnp.float32) * 0.02
        b = jax.random.normal(kb, (1, fan_out), jnp.float32) * 0.02
        return w, b

    w1, b1 = lin(ks[0], IN_DIM + label_dim, HID_DIM)           # fc1
    w21, b21 = lin(ks[1], HID_DIM, latent_dim)                 # fc21
    w22, b22 = lin(ks[2], HID_DIM, latent_dim)                 # fc22
    w3, b3 = lin(ks[3], latent_dim + label_dim, HID_DIM)       # fc3
    w4, b4 = lin(ks[4], HID_DIM, IN_DIM)                       # fc4
    return dict(w1x=w1[:IN_DIM], w1c=w1[IN_DIM:], b1=b1,
                w21=w21, b21=b21, w22=w22, b22=b22,
                w3z=w3[:latent_dim], w3c=w3[latent_dim:], b3=b3,
                w4=w4, b4=b4)


def prepare_params(params):
    """Pack raw params into lane-padded bf16 kernel weights (zero-filled padding)."""
    label_dim = params["w1c"].shape[0]

    w1x = _pad_to(params["w1x"], (IN_DIM, HID_PAD)).astype(jnp.bfloat16)     # (784, 512)

    # Fused resident label-conditioning table: cols [0:512) fc1, [512:1024) fc3.
    wc = jnp.zeros((LAB_PAD, 2 * HID_PAD), jnp.float32)
    wc = wc.at[:label_dim, :HID_DIM].set(params["w1c"])
    wc = wc.at[:label_dim, HID_PAD:HID_PAD + HID_DIM].set(params["w3c"])
    b13 = jnp.zeros((1, 2 * HID_PAD), jnp.float32)                            # f32 biases
    b13 = b13.at[:, :HID_DIM].set(params["b1"])
    b13 = b13.at[:, HID_PAD:HID_PAD + HID_DIM].set(params["b3"])

    # Fused mu/logvar head; each head in its own 128-lane slot.
    w2 = jnp.zeros((HID_PAD, 2 * LAT_PAD), jnp.float32)
    w2 = w2.at[:HID_DIM, :LAT_DIM].set(params["w21"])
    w2 = w2.at[:HID_DIM, LAT_PAD:LAT_PAD + LAT_DIM].set(params["w22"])
    b2 = jnp.zeros((1, 2 * LAT_PAD), jnp.float32)
    b2 = b2.at[:, :LAT_DIM].set(params["b21"])
    b2 = b2.at[:, LAT_PAD:LAT_PAD + LAT_DIM].set(params["b22"])

    w3z = _pad_to(params["w3z"], (LAT_PAD, HID_PAD)).astype(jnp.bfloat16)     # (128, 512)
    w4 = _pad_to(params["w4"], (HID_PAD, IN_DIM)).astype(jnp.bfloat16)        # (512, 784)
    b4 = params["b4"]                                                         # (1, 784) f32

    return dict(w1x=w1x, wc=wc.astype(jnp.bfloat16), b13=b13,
                w2=w2.astype(jnp.bfloat16), b2=b2, w3z=w3z, w4=w4, b4=b4)


@functools.partial(jax.jit, static_argnames=("block_b",))
def cvae_forward(x, c_idx, eps, kp, block_b=256):
    # block_b=256 is v5e-safe under the 16 MiB scoped-VMEM default; raise to 512+ on v6e/v7x.
    B = x.shape[0]
    rows = _round_up(B, 8)
    tb = min(block_b, rows)
    # Ensure >= 2 grid steps when the batch allows it, so ("parallel",) actually shards
    # the batch across both TensorCores on v7x.
    if rows > 8 and -(-B // tb) < 2:
        tb = _round_up(-(-rows // 2), 8)
    grid = -(-B // tb)

    x_bf = x.astype(jnp.bfloat16)                   # halve the dominant input stream
    c2 = c_idx.reshape(B, 1).astype(jnp.int32)      # label index; one-hot built in-kernel

    act = lambda d: pl.BlockSpec((tb, d), lambda i: (i, 0))          # batch-tiled streams
    res = lambda *s: pl.BlockSpec(s, lambda i: (0,) * len(s))        # resident weights
    # NOTE: resident specs could be single-buffered (pipeline_mode=pl.Buffered(1)) to save
    # ~2 MiB VMEM; left at the default since headroom is ample at these sizes.

    return pl.pallas_call(
        cvae_kernel,
        out_shape=jax.ShapeDtypeStruct((B, IN_DIM), jnp.float32),
        grid_spec=pltpu.PrefetchScalarGridSpec(
            num_scalar_prefetch=0,
            grid=(grid,),
            in_specs=[act(IN_DIM), act(1), act(LAT_PAD),
                      res(IN_DIM, HID_PAD),
                      res(LAB_PAD, 2 * HID_PAD), res(1, 2 * HID_PAD),
                      res(HID_PAD, 2 * LAT_PAD), res(1, 2 * LAT_PAD),
                      res(LAT_PAD, HID_PAD),
                      res(HID_PAD, IN_DIM), res(1, IN_DIM)],
            out_specs=act(IN_DIM),
        ),
        compiler_params=pltpu.CompilerParams(
            dimension_semantics=("parallel",)),     # batch axis shards across TCs (v7x)
    )(x_bf, c2, eps,
      kp["w1x"], kp["wc"], kp["b13"], kp["w2"], kp["b2"],
      kp["w3z"], kp["w4"], kp["b4"])


def cvae_reference(x, c_idx, eps, params, label_dim):
    """Pure-JAX f32 reference matching the torch module's forward."""
    c = jax.nn.one_hot(c_idx, label_dim, dtype=jnp.float32)
    h1 = jax.nn.relu(x @ params["w1x"] + c @ params["w1c"] + params["b1"])
    mu = h1 @ params["w21"] + params["b21"]
    logvar = h1 @ params["w22"] + params["b22"]
    z = mu + eps * jnp.exp(0.5 * logvar)
    h3 = jax.nn.relu(z @ params["w3z"] + c @ params["w3c"] + params["b3"])
    return jax.nn.sigmoid(h3 @ params["w4"] + params["b4"])


if __name__ == "__main__":
    key = jax.random.PRNGKey(0)
    k_param, k_x, k_c, k_eps = jax.random.split(key, 4)

    B, label_dim = 8, 10
    params = init_params(k_param, label_dim=label_dim, latent_dim=LAT_DIM)
    kp = prepare_params(params)

    x = jax.random.uniform(k_x, (B, IN_DIM), jnp.float32)        # flattened MNIST-like image
    c_idx = jax.random.randint(k_c, (B,), 0, label_dim)           # conditioning label index
    eps = jax.random.normal(k_eps, (B, LAT_PAD), jnp.float32)     # reparam noise (lane-padded)

    recon = cvae_forward(x, c_idx, eps, kp)
    jax.block_until_ready(recon)

    ref = cvae_reference(x, c_idx, eps[:, :LAT_DIM], params, label_dim)
    err = float(jnp.max(jnp.abs(recon - ref)))

    assert recon.shape == (B, IN_DIM)
    assert bool(jnp.all(jnp.isfinite(recon)))
    assert bool(jnp.all((recon >= 0.0) & (recon <= 1.0)))
    assert err < 3e-2, f"mismatch vs f32 reference: {err}"   # bf16 weights/inputs -> loose tol
    print("KERNEL_OK")
</pallas_src>

<mosaic_0001>
module attributes {stable_mosaic.version = 11 : i64} {
  func.func @cvae_kernel(%arg0: i32, %arg1: memref<8x784xbf16, #tpu.memory_space<vmem>>, %arg2: memref<8x1xi32, #tpu.memory_space<vmem>>, %arg3: memref<8x128xf32, #tpu.memory_space<vmem>>, %arg4: memref<784x512xbf16, #tpu.memory_space<vmem>>, %arg5: memref<128x1024xbf16, #tpu.memory_space<vmem>>, %arg6: memref<1x1024xf32, #tpu.memory_space<vmem>>, %arg7: memref<512x256xbf16, #tpu.memory_space<vmem>>, %arg8: memref<1x256xf32, #tpu.memory_space<vmem>>, %arg9: memref<128x512xbf16, #tpu.memory_space<vmem>>, %arg10: memref<512x784xbf16, #tpu.memory_space<vmem>>, %arg11: memref<1x784xf32, #tpu.memory_space<vmem>>, %arg12: memref<8x784xf32, #tpu.memory_space<vmem>>) attributes {dimension_semantics = [#tpu.dimension_semantics<parallel>], iteration_bounds = array<i64: 1>, scalar_prefetch = 0 : i64, scratch_operands = 0 : i64, tpu.core_type = #tpu.core_type<tc>, window_params = [{transform_indices = @transform_0, window_bounds = array<i64: 8, 784>}, {transform_indices = @transform_1, window_bounds = array<i64: 8, 1>}, {transform_indices = @transform_2, window_bounds = array<i64: 8, 128>}, {pipeline_mode = #tpu.pipeline_mode<synchronous>, transform_indices = @transform_3, window_bounds = array<i64: 784, 512>}, {pipeline_mode = #tpu.pipeline_mode<synchronous>, transform_indices = @transform_4, window_bounds = array<i64: 128, 1024>}, {pipeline_mode = #tpu.pipeline_mode<synchronous>, transform_indices = @transform_5, window_bounds = array<i64: 1, 1024>}, {pipeline_mode = #tpu.pipeline_mode<synchronous>, transform_indices = @transform_6, window_bounds = array<i64: 512, 256>}, {pipeline_mode = #tpu.pipeline_mode<synchronous>, transform_indices = @transform_7, window_bounds = array<i64: 1, 256>}, {pipeline_mode = #tpu.pipeline_mode<synchronous>, transform_indices = @transform_8, window_bounds = array<i64: 128, 512>}, {pipeline_mode = #tpu.pipeline_mode<synchronous>, transform_indices = @transform_9, window_bounds = array<i64: 512, 784>}, {pipeline_mode = #tpu.pipeline_mode<synchronous>, transform_indices = @transform_10, window_bounds = array<i64: 1, 784>}, {transform_indices = @transform_11, window_bounds = array<i64: 8, 784>}]} {
    %0 = tpu.iota {dimensions = array<i32: 1>} : vector<8x128xi32>
    %c0 = arith.constant 0 : index
    %c0_0 = arith.constant 0 : index
    %1 = vector.load %arg2[%c0, %c0_0] : memref<8x1xi32, #tpu.memory_space<vmem>>, vector<8x1xi32>
    %2 = vector.broadcast %1 : vector<8x1xi32> to vector<8x128xi32>
    %3 = arith.cmpi eq, %0, %2 : vector<8x128xi32>
    %cst = arith.constant 1.000000e+00 : f32
    %cst_1 = arith.constant 0.000000e+00 : f32
    %4 = vector.broadcast %cst : f32 to vector<8x128xf32>
    %5 = vector.broadcast %cst_1 : f32 to vector<8x128xf32>
    %6 = arith.select %3, %4, %5 : vector<8x128xi1>, vector<8x128xf32>
    %7 = arith.truncf %6 : vector<8x128xf32> to vector<8x128xbf16>
    %c0_2 = arith.constant 0 : index
    %c0_3 = arith.constant 0 : index
    %8 = vector.load %arg5[%c0_2, %c0_3] : memref<128x1024xbf16, #tpu.memory_space<vmem>>, vector<128x1024xbf16>
    %cst_4 = arith.constant dense<0.000000e+00> : vector<8x1024xf32>
    %9 = tpu.matmul %7, %8, %cst_4 {dimension_numbers = #tpu.dot_dimension_numbers<[1], [0], [0], [1], [0, 0, 1, 1], [], []>} : vector<8x128xbf16>, vector<128x1024xbf16>, vector<8x1024xf32> -> vector<8x1024xf32>
    %c0_5 = arith.constant 0 : index
    %c0_6 = arith.constant 0 : index
    %10 = vector.load %arg6[%c0_5, %c0_6] : memref<1x1024xf32, #tpu.memory_space<vmem>>, vector<1x1024xf32>
    %11 = vector.broadcast %10 : vector<1x1024xf32> to vector<8x1024xf32>
    %12 = arith.addf %9, %11 : vector<8x1024xf32>
    %13 = vector.extract_strided_slice %12 {offsets = [0, 0], sizes = [8, 512], strides = [1, 1]} : vector<8x1024xf32> to vector<8x512xf32>
    %14 = vector.extract_strided_slice %12 {offsets = [0, 512], sizes = [8, 512], strides = [1, 1]} : vector<8x1024xf32> to vector<8x512xf32>
    %c0_7 = arith.constant 0 : index
    %c0_8 = arith.constant 0 : index
    %15 = vector.load %arg1[%c0_7, %c0_8] : memref<8x784xbf16, #tpu.memory_space<vmem>>, vector<8x784xbf16>
    %c0_9 = arith.constant 0 : index
    %c0_10 = arith.constant 0 : index
    %16 = vector.load %arg4[%c0_9, %c0_10] : memref<784x512xbf16, #tpu.memory_space<vmem>>, vector<784x512xbf16>
    %cst_11 = arith.constant dense<0.000000e+00> : vector<8x512xf32>
    %17 = tpu.matmul %15, %16, %cst_11 {dimension_numbers = #tpu.dot_dimension_numbers<[1], [0], [0], [1], [0, 0, 1, 1], [], []>} : vector<8x784xbf16>, vector<784x512xbf16>, vector<8x512xf32> -> vector<8x512xf32>
    %18 = arith.addf %17, %13 : vector<8x512xf32>
    %cst_12 = arith.constant 0.000000e+00 : f32
    %19 = vector.broadcast %cst_12 : f32 to vector<8x512xf32>
    %20 = arith.maximumf %18, %19 : vector<8x512xf32>
    %21 = arith.truncf %20 : vector<8x512xf32> to vector<8x512xbf16>
    %c0_13 = arith.constant 0 : index
    %c0_14 = arith.constant 0 : index
    %22 = vector.load %arg7[%c0_13, %c0_14] : memref<512x256xbf16, #tpu.memory_space<vmem>>, vector<512x256xbf16>
    %cst_15 = arith.constant dense<0.000000e+00> : vector<8x256xf32>
    %23 = tpu.matmul %21, %22, %cst_15 {dimension_numbers = #tpu.dot_dimension_numbers<[1], [0], [0], [1], [0, 0, 1, 1], [], []>} : vector<8x512xbf16>, vector<512x256xbf16>, vector<8x256xf32> -> vector<8x256xf32>
    %c0_16 = arith.constant 0 : index
    %c0_17 = arith.constant 0 : index
    %24 = vector.load %arg8[%c0_16, %c0_17] : memref<1x256xf32, #tpu.memory_space<vmem>>, vector<1x256xf32>
    %25 = vector.broadcast %24 : vector<1x256xf32> to vector<8x256xf32>
    %26 = arith.addf %23, %25 : vector<8x256xf32>
    %27 = vector.extract_strided_slice %26 {offsets = [0, 0], sizes = [8, 128], strides = [1, 1]} : vector<8x256xf32> to vector<8x128xf32>
    %28 = vector.extract_strided_slice %26 {offsets = [0, 128], sizes = [8, 128], strides = [1, 1]} : vector<8x256xf32> to vector<8x128xf32>
    %c0_18 = arith.constant 0 : index
    %c0_19 = arith.constant 0 : index
    %29 = vector.load %arg3[%c0_18, %c0_19] : memref<8x128xf32, #tpu.memory_space<vmem>>, vector<8x128xf32>
    %cst_20 = arith.constant 5.000000e-01 : f32
    %30 = vector.broadcast %cst_20 : f32 to vector<8x128xf32>
    %31 = arith.mulf %30, %28 : vector<8x128xf32>
    %32 = math.exp %31 : vector<8x128xf32>
    %33 = arith.mulf %29, %32 : vector<8x128xf32>
    %34 = arith.addf %27, %33 : vector<8x128xf32>
    %35 = arith.truncf %34 : vector<8x128xf32> to vector<8x128xbf16>
    %c0_21 = arith.constant 0 : index
    %c0_22 = arith.constant 0 : index
    %36 = vector.load %arg9[%c0_21, %c0_22] : memref<128x512xbf16, #tpu.memory_space<vmem>>, vector<128x512xbf16>
    %cst_23 = arith.constant dense<0.000000e+00> : vector<8x512xf32>
    %37 = tpu.matmul %35, %36, %cst_23 {dimension_numbers = #tpu.dot_dimension_numbers<[1], [0], [0], [1], [0, 0, 1, 1], [], []>} : vector<8x128xbf16>, vector<128x512xbf16>, vector<8x512xf32> -> vector<8x512xf32>
    %38 = arith.addf %37, %14 : vector<8x512xf32>
    %cst_24 = arith.constant 0.000000e+00 : f32
    %39 = vector.broadcast %cst_24 : f32 to vector<8x512xf32>
    %40 = arith.maximumf %38, %39 : vector<8x512xf32>
    %41 = arith.truncf %40 : vector<8x512xf32> to vector<8x512xbf16>
    %c0_25 = arith.constant 0 : index
    %c0_26 = arith.constant 0 : index
    %42 = vector.load %arg10[%c0_25, %c0_26] : memref<512x784xbf16, #tpu.memory_space<vmem>>, vector<512x784xbf16>
    %cst_27 = arith.constant dense<0.000000e+00> : vector<8x784xf32>
    %43 = tpu.matmul %41, %42, %cst_27 {dimension_numbers = #tpu.dot_dimension_numbers<[1], [0], [0], [1], [0, 0, 1, 1], [], []>} : vector<8x512xbf16>, vector<512x784xbf16>, vector<8x784xf32> -> vector<8x784xf32>
    %c0_28 = arith.constant 0 : index
    %c0_29 = arith.constant 0 : index
    %44 = vector.load %arg11[%c0_28, %c0_29] : memref<1x784xf32, #tpu.memory_space<vmem>>, vector<1x784xf32>
    %45 = vector.broadcast %44 : vector<1x784xf32> to vector<8x784xf32>
    %46 = arith.addf %43, %45 : vector<8x784xf32>
    %47 = arith.negf %46 : vector<8x784xf32>
    %48 = math.exp %47 : vector<8x784xf32>
    %cst_30 = arith.constant 1.000000e+00 : f32
    %49 = vector.broadcast %cst_30 : f32 to vector<8x784xf32>
    %50 = arith.addf %49, %48 : vector<8x784xf32>
    %51 = arith.divf %49, %50 : vector<8x784xf32>
    %c0_31 = arith.constant 0 : index
    %c0_32 = arith.constant 0 : index
    %52 = vector.load %arg12[%c0_31, %c0_32] : memref<8x784xf32, #tpu.memory_space<vmem>>, vector<8x784xf32>
    tpu.vector_store %arg12[%c0_31, %c0_32], %51 {strides = array<i32>} : memref<8x784xf32, #tpu.memory_space<vmem>>, vector<8x784xf32>,
    return
  }
  func.func @transform_0(%arg0: i32) -> (i32, i32) {
    %c0_i32 = arith.constant 0 : i32
    %c0_i32_0 = arith.constant 0 : i32
    return %arg0, %c0_i32 : i32, i32
  }
  func.func @transform_1(%arg0: i32) -> (i32, i32) {
    %c0_i32 = arith.constant 0 : i32
    %c0_i32_0 = arith.constant 0 : i32
    return %arg0, %c0_i32 : i32, i32
  }
  func.func @transform_2(%arg0: i32) -> (i32, i32) {
    %c0_i32 = arith.constant 0 : i32
    %c0_i32_0 = arith.constant 0 : i32
    return %arg0, %c0_i32 : i32, i32
  }
  func.func @transform_3(%arg0: i32) -> (i32, i32) {
    %c0_i32 = arith.constant 0 : i32
    %c0_i32_0 = arith.constant 0 : i32
    %c0_i32_1 = arith.constant 0 : i32
    return %c0_i32, %c0_i32_0 : i32, i32
  }
  func.func @transform_4(%arg0: i32) -> (i32, i32) {
    %c0_i32 = arith.constant 0 : i32
    %c0_i32_0 = arith.constant 0 : i32
    %c0_i32_1 = arith.constant 0 : i32
    return %c0_i32, %c0_i32_0 : i32, i32
  }
  func.func @transform_5(%arg0: i32) -> (i32, i32) {
    %c0_i32 = arith.constant 0 : i32
    %c0_i32_0 = arith.constant 0 : i32
    %c0_i32_1 = arith.constant 0 : i32
    return %c0_i32, %c0_i32_0 : i32, i32
  }
  func.func @transform_6(%arg0: i32) -> (i32, i32) {
    %c0_i32 = arith.constant 0 : i32
    %c0_i32_0 = arith.constant 0 : i32
    %c0_i32_1 = arith.constant 0 : i32
    return %c0_i32, %c0_i32_0 : i32, i32
  }
  func.func @transform_7(%arg0: i32) -> (i32, i32) {
    %c0_i32 = arith.constant 0 : i32
    %c0_i32_0 = arith.constant 0 : i32
    %c0_i32_1 = arith.constant 0 : i32
    return %c0_i32, %c0_i32_0 : i32, i32
  }
  func.func @transform_8(%arg0: i32) -> (i32, i32) {
    %c0_i32 = arith.constant 0 : i32
    %c0_i32_0 = arith.constant 0 : i32
    %c0_i32_1 = arith.constant 0 : i32
    return %c0_i32, %c0_i32_0 : i32, i32
  }
  func.func @transform_9(%arg0: i32) -> (i32, i32) {
    %c0_i32 = arith.constant 0 : i32
    %c0_i32_0 = arith.constant 0 : i32
    %c0_i32_1 = arith.constant 0 : i32
    return %c0_i32, %c0_i32_0 : i32, i32
  }
  func.func @transform_10(%arg0: i32) -> (i32, i32) {
    %c0_i32 = arith.constant 0 : i32
    %c0_i32_0 = arith.constant 0 : i32
    %c0_i32_1 = arith.constant 0 : i32
    return %c0_i32, %c0_i32_0 : i32, i32
  }
  func.func @transform_11(%arg0: i32) -> (i32, i32) {
    %c0_i32 = arith.constant 0 : i32
    %c0_i32_0 = arith.constant 0 : i32
    return %arg0, %c0_i32 : i32, i32
  }
}

</mosaic_0001>

<bundles_post_ra>
// kernel: cvae_forward.1
= control target key start
LH: loop header
LB: loop body
LE: loop exit
PB: predicated region body
PF: predicated region fallthrough
CT: control target
= control target key end

     0   :  { %v6319_v3 = vmov 0   ;;  %s8340_s0 = inlined_call_operand.vmem [shape: bf16[8,784], index: 0, kind: input, shape index: {}]   ;;  %s8341_s1 = inlined_call_operand.vmem [shape: s32[8,1], index: 1, kind: input, shape index: {}]   ;;  %s8342_s2 = inlined_call_operand.vmem [shape: f32[8,128], index: 2, kind: input, shape index: {}]   ;;  %s8343_s3 = inlined_call_operand.vmem [shape: bf16[784,512], index: 3, kind: input, shape index: {}]   ;;  %s8344_s4 = inlined_call_operand.vmem [shape: bf16[128,1024], index: 4, kind: input, shape index: {}]   ;;  %s8345_s5 = inlined_call_operand.vmem [shape: f32[1,1024], index: 5, kind: input, shape index: {}]   ;;  %s8346_s6 = inlined_call_operand.vmem [shape: bf16[512,256], index: 6, kind: input, shape index: {}]   ;;  %s8347_s7 = inlined_call_operand.vmem [shape: f32[1,256], index: 7, kind: input, shape index: {}]   ;;  %s8348_s8 = inlined_call_operand.vmem [shape: bf16[128,512], index: 8, kind: input, shape index: {}]   ;;  %s8349_s9 = inlined_call_operand.vmem [shape: bf16[512,784], index: 9, kind: input, shape index: {}]   ;;  %s8350_s10 = inlined_call_operand.vmem [shape: f32[1,784], index: 10, kind: input, shape index: {}]   ;;  %s8351_s11 = inlined_call_operand.hbm [shape: f32[8,784], index: 11, kind: output, shape index: {}]  }
   0x1   :  { %v42_v0 = vld [vmem:[%s8341_s1] sm:$0xff]  ;;  %5499 = vset.pattern.permute.xlu0 %v6319_v3  ;;  %v51_v5 = vld [vmem:[%s8344_s4 + $0x10] sm:$0xff]  ;;  %507 = vmatprep.mubr.bf16.mxu1 %v6319_v3  ;;  %v6451_v36 = vld [vmem:[%s8344_s4 + $0x8] sm:$0xff] }
   0x2   :  { %v49_v1 = vld [vmem:[%s8344_s4] sm:$0xff]  ;;  %v55_v6 = vld [vmem:[%s8344_s4 + $0x30] sm:$0xff]  ;;  %44 = vperm.xlu0 %5499, %v42_v0   ;;  %589 = vmatprep.mubr.bf16.mxu0 %v6319_v3  ;;  %v6456_v37 = vld [vmem:[%s8344_s4 + $0x28] sm:$0xff] }
   0x3   :  { %v53_v2 = vld [vmem:[%s8344_s4 + $0x20] sm:$0xff]  ;;  %v4789_v9 = vcombine.high %v51_v5, %v55_v6  ;;  %v4788_v10 = vcombine.low %v51_v5, %v55_v6  ;;  %v59_v12 = vld [vmem:[%s8344_s4 + $0x50] sm:$0xff]  ;;  %v4786_v39 = vcombine.low %v6451_v36, %v6456_v37  ;;  %v4787_v6 = vcombine.high %v6451_v36, %v6456_v37 }
   0x4   :  { %v4785_v4 = vcombine.high %v49_v1, %v53_v2  ;;  %v4784_v7 = vcombine.low %v49_v1, %v53_v2  ;;  %v57_v8 = vld [vmem:[%s8344_s4 + $0x40] sm:$0xff]  ;;  %v63_v13 = vld [vmem:[%s8344_s4 + $0x70] sm:$0xff] }
   0x5   :  { %v61_v11 = vld [vmem:[%s8344_s4 + $0x60] sm:$0xff]  ;;  %v4797_v15 = vcombine.high %v59_v12, %v63_v13  ;;  %v67_v18 = vld [vmem:[%s8344_s4 + $0x90] sm:$0xff]  ;;  %557 = vmatprep.subr.bf16.mxu0 %v4789_v9  ;;  %v4796_v21 = vcombine.low %v59_v12, %v63_v13  ;;  %v58_v9 = vld [vmem:[%s8344_s4 + $0x48] sm:$0xff] }
   0x6   :  { %475 = vmatprep.subr.bf16.mxu1 %v4785_v4  ;;  %v4793_v14 = vcombine.high %v57_v8, %v61_v11  ;;  %v65_v16 = vld [vmem:[%s8344_s4 + $0x80] sm:$0xff]  ;;  %v4792_v19 = vcombine.low %v57_v8, %v61_v11  ;;  %v71_v20 = vld [vmem:[%s8344_s4 + $0xb0] sm:$0xff]  ;;  %558 = vmatpush1.bf16.msra.mxu0 %v4788_v10  ;;  %v40_v8 = vlaneseq  ;;  %v62_v11 = vld [vmem:[%s8344_s4 + $0x68] sm:$0xff] }
   0x7   :  { %v69_v17 = vld [vmem:[%s8344_s4 + $0xa0] sm:$0xff]  ;;  %476 = vmatpush1.bf16.msra.mxu1 %v4784_v7  ;;  %559 = vmatprep.subr.bf16.mxu0 %v4797_v15  ;;  %v4805_v23 = vcombine.high %v67_v18, %v71_v20  ;;  %v75_v26 = vld [vmem:[%s8344_s4 + $0xd0] sm:$0xff]  ;;  %v4804_v29 = vcombine.low %v67_v18, %v71_v20  ;;  %v70_v18 = vld [vmem:[%s8344_s4 + $0xa8] sm:$0xff] }
   0x8   :  { %477 = vmatprep.subr.bf16.mxu1 %v4793_v14  ;;  %v4801_v22 = vcombine.high %v65_v16, %v69_v17  ;;  %v73_v24 = vld [vmem:[%s8344_s4 + $0xc0] sm:$0xff]  ;;  %v79_v27 = vld [vmem:[%s8344_s4 + $0xf0] sm:$0xff]  ;;  %v4800_v28 = vcombine.low %v65_v16, %v69_v17  ;;  %v41_v10 = vand.u32 127, %v40_v8  ;;  %v4795_v16 = vcombine.high %v58_v9, %v62_v11  ;;  %v66_v17 = vld [vmem:[%s8344_s4 + $0x88] sm:$0xff] }
   0x9   :  { %v77_v25 = vld [vmem:[%s8344_s4 + $0xe0] sm:$0xff]  ;;  %v4813_v32 = vcombine.high %v75_v26, %v79_v27  ;;  %v83_v34 = vld [vmem:[%s8344_s4 + $0x110] sm:$0xff]  ;;  %v4812_v40 = vcombine.low %v75_v26, %v79_v27  ;;  %v74_v26 = vld [vmem:[%s8344_s4 + $0xc8] sm:$0xff] }
   0xa   :  { %560 = vmatpush1.bf16.msra.mxu0 %v4796_v21  ;;  %v4809_v30 = vcombine.high %v73_v24, %v77_v25  ;;  %v81_v31 = vld [vmem:[%s8344_s4 + $0x100] sm:$0xff]  ;;  %v87_v35 = vld [vmem:[%s8344_s4 + $0x130] sm:$0xff]  ;;  %v4808_v38 = vcombine.low %v73_v24, %v77_v25  ;;  %v6320_v21 = vmov 1.0|1.0   ;;  %v4803_v25 = vcombine.high %v66_v17, %v70_v18  ;;  %v78_v27 = vld [vmem:[%s8344_s4 + $0xe8] sm:$0xff] }
   0xb   :  { %478 = vmatpush1.bf16.msra.mxu1 %v4792_v19  ;;  %561 = vmatprep.subr.bf16.mxu0 %v4805_v23  ;;  %v85_v33 = vld [vmem:[%s8344_s4 + $0x120] sm:$0xff]  ;;  %v4821_v42 = vcombine.high %v83_v34, %v87_v35  ;;  %v91_v45 = vld [vmem:[%s8344_s4 + $0x150] sm:$0xff]  ;;  %v4820_v48 = vcombine.low %v83_v34, %v87_v35  ;;  %v4810_v34 = vcombine.low %v74_v26, %v78_v27 }
   0xc   :  { %479 = vmatprep.subr.bf16.mxu1 %v4801_v22  ;;  %v4817_v41 = vcombine.high %v81_v31, %v85_v33  ;;  %v89_v43 = vld [vmem:[%s8344_s4 + $0x140] sm:$0xff]  ;;  %v95_v46 = vld [vmem:[%s8344_s4 + $0x170] sm:$0xff]  ;;  %v4816_v47 = vcombine.low %v81_v31, %v85_v33  ;;  %v4794_v22 = vcombine.low %v58_v9, %v62_v11  ;;  %v4811_v31 = vcombine.high %v74_v26, %v78_v27  ;;  %v86_v33 = vld [vmem:[%s8344_s4 + $0x128] sm:$0xff] }
   0xd   :  { %v93_v44 = vld [vmem:[%s8344_s4 + $0x160] sm:$0xff]  ;;  %v4829_v50 = vcombine.high %v91_v45, %v95_v46  ;;  %v99_v53 = vld [vmem:[%s8344_s4 + $0x190] sm:$0xff]  ;;  %v4828_v56 = vcombine.low %v91_v45, %v95_v46  ;;  %v102_v45 = vld [vmem:[%s8344_s4 + $0x1a8] sm:$0xff] }
   0xe   :  { %562 = vmatpush1.bf16.msra.mxu0 %v4804_v29  ;;  %v4825_v49 = vcombine.high %v89_v43, %v93_v44  ;;  %v97_v51 = vld [vmem:[%s8344_s4 + $0x180] sm:$0xff]  ;;  %v103_v54 = vld [vmem:[%s8344_s4 + $0x1b0] sm:$0xff]  ;;  %v4824_v55 = vcombine.low %v89_v43, %v93_v44  ;;  %v98_v44 = vld [vmem:[%s8344_s4 + $0x188] sm:$0xff] }
   0xf   :  { %480 = vmatpush1.bf16.msra.mxu1 %v4800_v28  ;;  %563 = vmatprep.subr.bf16.mxu0 %v4813_v32  ;;  %v101_v52 = vld [vmem:[%s8344_s4 + $0x1a0] sm:$0xff]  ;;  %v4837_v60 = vcombine.high %v99_v53, %v103_v54  ;;  %v107_v61 = vld [vmem:[%s8344_s4 + $0x1d0] sm:$0xff]  ;;  %v4836_v0 = vcombine.low %v99_v53, %v103_v54  ;;  %v4802_v28 = vcombine.low %v66_v17, %v70_v18  ;;  %v82_v32 = vld [vmem:[%s8344_s4 + $0x108] sm:$0xff] }
  0x10   :  { %481 = vmatprep.subr.bf16.mxu1 %v4809_v30  ;;  %v4833_v57 = vcombine.high %v97_v51, %v101_v52  ;;  %v105_v58 = vld [vmem:[%s8344_s4 + $0x1c0] sm:$0xff]  ;;  %v111_v62 = vld [vmem:[%s8344_s4 + $0x1f0] sm:$0xff]  ;;  %v4832_v63 = vcombine.low %v97_v51, %v101_v52  ;;  %v4819_v37 = vcombine.high %v82_v32, %v86_v33  ;;  %v110_v51 = vld [vmem:[%s8344_s4 + $0x1e8] sm:$0xff]  ;;  %v4834_v52 = vcombine.low %v98_v44, %v102_v45 }
  0x11   :  { %v109_v59 = vld [vmem:[%s8344_s4 + $0x1e0] sm:$0xff]  ;;  %v4845_v2 = vcombine.high %v107_v61, %v111_v62  ;;  %v4844_v5 = vcombine.low %v107_v61, %v111_v62  ;;  %v60_v62 = vld [vmem:[%s8344_s4 + $0x58] sm:$0xff] }
  0x12   :  { %564 = vmatpush1.bf16.msra.mxu0 %v4812_v40  ;;  %v4841_v1 = vcombine.high %v105_v58, %v109_v59  ;;  %v4840_v4 = vcombine.low %v105_v58, %v109_v59  ;;  %v5502_v7 = vld [vmem:[%s8343_s3 + $0x4] ss:$16 sps:$4 sm:$0xff]   ;;  %v5500_v14 = vld [vmem:[%s8343_s3] ss:$16 sps:$4 sm:$0xff]   ;;  %v4818_v40 = vcombine.low %v82_v32, %v86_v33 }
  0x13   :  { %482 = vmatpush1.bf16.msra.mxu1 %v4808_v38  ;;  %565 = vmatprep.subr.bf16.mxu0 %v4821_v42  ;;  %v6511_v12 = vld [vmem:[%s8340_s0] sm:$0xff]  ;;  %v90_v38 = vld [vmem:[%s8344_s4 + $0x148] sm:$0xff] }
  0x14   :  { %483 = vmatprep.subr.bf16.mxu1 %v4817_v41  ;;  %v5505_v15 = vld [vmem:[%s8343_s3 + $0x24] ss:$16 sps:$4 sm:$0xff]   ;;  %v6531_v20 = vcombine.high %v6511_v12, %v6511_v12  ;;  %v5503_v23 = vld [vmem:[%s8343_s3 + $0x20] ss:$16 sps:$4 sm:$0xff]  }
  0x15   :  { %v5508_v24 = vld [vmem:[%s8343_s3 + $0x44] ss:$16 sps:$4 sm:$0xff]   ;;  %v5506_v29 = vld [vmem:[%s8343_s3 + $0x40] ss:$16 sps:$4 sm:$0xff]  }
  0x16   :  { %566 = vmatpush1.bf16.msra.mxu0 %v4820_v48  ;;  %v5511_v30 = vld [vmem:[%s8343_s3 + $0x64] ss:$16 sps:$4 sm:$0xff]   ;;  %v5509_v35 = vld [vmem:[%s8343_s3 + $0x60] ss:$16 sps:$4 sm:$0xff]  }
  0x17   :  { %484 = vmatpush1.bf16.msra.mxu1 %v4816_v47  ;;  %567 = vmatprep.subr.bf16.mxu0 %v4829_v50  ;;  %v5514_v36 = vld [vmem:[%s8343_s3 + $0x84] ss:$16 sps:$4 sm:$0xff]   ;;  %v5512_v41 = vld [vmem:[%s8343_s3 + $0x80] ss:$16 sps:$4 sm:$0xff]   ;;  %v106_v50 = vld [vmem:[%s8344_s4 + $0x1c8] sm:$0xff] }
  0x18   :  { %485 = vmatprep.subr.bf16.mxu1 %v4825_v49  ;;  %v5517_v42 = vld [vmem:[%s8343_s3 + $0xa4] ss:$16 sps:$4 sm:$0xff]   ;;  %v5515_v47 = vld [vmem:[%s8343_s3 + $0xa0] ss:$16 sps:$4 sm:$0xff]   ;;  %v4835_v49 = vcombine.high %v98_v44, %v102_v45  ;;  %v4842_v58 = vcombine.low %v106_v50, %v110_v51 }
  0x19   :  { %v5520_v48 = vld [vmem:[%s8343_s3 + $0xc4] ss:$16 sps:$4 sm:$0xff]   ;;  %v5518_v53 = vld [vmem:[%s8343_s3 + $0xc0] ss:$16 sps:$4 sm:$0xff]  }
  0x1a   :  { %568 = vmatpush1.bf16.msra.mxu0 %v4828_v56  ;;  %v5523_v54 = vld [vmem:[%s8343_s3 + $0xe4] ss:$16 sps:$4 sm:$0xff]   ;;  %v52_v56 = vld [vmem:[%s8344_s4 + $0x18] sm:$0xff]  ;;  %v5521_v59 = vld [vmem:[%s8343_s3 + $0xe0] ss:$16 sps:$4 sm:$0xff]  }
  0x1b   :  { %486 = vmatpush1.bf16.msra.mxu1 %v4824_v55  ;;  %569 = vmatprep.subr.bf16.mxu0 %v4837_v60  ;;  %v4843_v55 = vcombine.high %v106_v50, %v110_v51  ;;  %v5526_v60 = vld [vmem:[%s8343_s3 + $0x104] ss:$16 sps:$4 sm:$0xff]   ;;  %v5527_v9 = vld [vmem:[%s8343_s3 + $0x120] ss:$16 sps:$4 sm:$0xff]   ;;  %v5553_v51 = vld [vmem:[%s8343_s3 + $0x8] ss:$16 sps:$4 sm:$0xff]  }
  0x1c   :  { %487 = vmatprep.subr.bf16.mxu1 %v4833_v57  ;;  %v56_v57 = vld [vmem:[%s8344_s4 + $0x38] sm:$0xff]  ;;  %v5535_v17 = vld [vmem:[%s8343_s3 + $0x164] ss:$16 sps:$4 sm:$0xff]   ;;  %v5550_v50 = vld [vmem:[%s8343_s3 + $0x200] ss:$16 sps:$4 sm:$0xff]  }
  0x1d   :  { %v4791_v61 = vcombine.high %v52_v56, %v56_v57  ;;  %v5538_v26 = vld [vmem:[%s8343_s3 + $0x184] ss:$16 sps:$4 sm:$0xff]   ;;  %v5562_v19 = vld [vmem:[%s8343_s3 + $0x240] ss:$16 sps:$4 sm:$0xff]  }
  0x1e   :  { %570 = vmatpush1.bf16.msra.mxu0 %v4836_v0  ;;  %v4790_v0 = vcombine.low %v52_v56, %v56_v57  ;;  %v5541_v32 = vld [vmem:[%s8343_s3 + $0x1a4] ss:$16 sps:$4 sm:$0xff]   ;;  %v5559_v56 = vld [vmem:[%s8343_s3 + $0x28] ss:$16 sps:$4 sm:$0xff]  }
  0x1f   :  { %488 = vmatpush1.bf16.msra.mxu1 %v4832_v63  ;;  %571 = vmatprep.subr.bf16.mxu0 %v4845_v2  ;;  %v64_v63 = vld [vmem:[%s8344_s4 + $0x78] sm:$0xff]  ;;  %v5529_v2 = vld [vmem:[%s8343_s3 + $0x124] ss:$16 sps:$4 sm:$0xff]  }
  0x20   :  { %489 = vmatprep.subr.bf16.mxu1 %v4841_v1  ;;  %v5524_v1 = vld [vmem:[%s8343_s3 + $0x100] ss:$16 sps:$4 sm:$0xff]   ;;  %v5547_v45 = vld [vmem:[%s8343_s3 + $0x1e4] ss:$16 sps:$4 sm:$0xff]  }
  0x22   :  { %572 = vmatpush1.bf16.msra.mxu0 %v4844_v5  ;;  %v68_v5 = vld [vmem:[%s8344_s4 + $0x98] sm:$0xff] }
  0x23   :  { %490 = vmatpush1.bf16.msra.mxu1 %v4840_v4  ;;  %1847 = vmatprep.subr.bf16.mxu0 %v5502_v7  ;;  %v4799_v4 = vcombine.high %v60_v62, %v64_v63  ;;  %v4798_v7 = vcombine.low %v60_v62, %v64_v63  ;;  %v5571_v62 = vld [vmem:[%s8343_s3 + $0x68] ss:$16 sps:$4 sm:$0xff]   ;;  %v5576_v63 = vld [vmem:[%s8343_s3 + $0x284] ss:$16 sps:$4 sm:$0xff]  }
  0x24   :  { %516 = vmatprep.subr.bf16.mxu1 %v4787_v6  ;;  %v72_v6 = vld [vmem:[%s8344_s4 + $0xb8] sm:$0xff] }
  0x25   :  { %v4807_v11 = vcombine.high %v68_v5, %v72_v6 }
  0x81   :  { %v45_v13 = vpop.permute.xlu0 %44 }
  0x82   :  { %vm46_vm0 = vcmp.eq.s32.totalorder %v41_v10, %v45_v13  ;;  %v5532_v10 = vld [vmem:[%s8343_s3 + $0x144] ss:$16 sps:$4 sm:$0xff]   ;;  %v76_v13 = vld [vmem:[%s8344_s4 + $0xd8] sm:$0xff] }
  0x83   :  { %vm6525_vm1 = vmpackc.low %vm46_vm0, %vm46_vm0 }
  0x84   :  { %4849 = vmatmul.mubr.msk.bf16.vlgmr.msra.gmra.mrb[0].mxu1 %vm6525_vm1, %v6320_v21  ;;  %4853 = vmatmul.mubr.msk.bf16.vlgmr.msra.gmra.mrb[0].mxu0 %vm6525_vm1, %v6320_v21 }
  0x85   :  { %517 = vmatpush1.bf16.msra.mxu1 %v4786_v39  ;;  %1848 = vmatpush1.bf16.msra.mxu0 %v5500_v14  ;;  %v94_v39 = vld [vmem:[%s8344_s4 + $0x168] sm:$0xff]  ;;  %v80_v14 = vld [vmem:[%s8344_s4 + $0xf8] sm:$0xff] }
  0x86   :  { %518 = vmatprep.subr.bf16.mxu1 %v4795_v16  ;;  %1849 = vmatprep.subr.bf16.mxu0 %v5505_v15  ;;  %v4827_v43 = vcombine.high %v90_v38, %v94_v39  ;;  %v4826_v46 = vcombine.low %v90_v38, %v94_v39  ;;  %v4806_v15 = vcombine.low %v68_v5, %v72_v6  ;;  %v5530_v16 = vld [vmem:[%s8343_s3 + $0x140] ss:$16 sps:$4 sm:$0xff]   ;;  %v5544_v38 = vld [vmem:[%s8343_s3 + $0x1c4] ss:$16 sps:$4 sm:$0xff]   ;;  %v5585_v5 = vld [vmem:[%s8343_s3 + $0xac] ss:$16 sps:$4 sm:$0xff]  }
  0x87   :  { %548 = vmatprep.mubr.bf16.mxu1 %v6319_v3  ;;  %1879 = vmatprep.mubr.bf16.mxu0 %v6531_v20  ;;  %v4815_v18 = vcombine.high %v76_v13, %v80_v14  ;;  %v5580_v6 = vld [vmem:[%s8343_s3 + $0x2a0] ss:$16 sps:$4 sm:$0xff]  }
  0x89   :  { %519 = vmatpush1.bf16.msra.mxu1 %v4794_v22  ;;  %1850 = vmatpush1.bf16.msra.mxu0 %v5503_v23  ;;  %v84_v22 = vld [vmem:[%s8344_s4 + $0x118] sm:$0xff] }
  0x8a   :  { %520 = vmatprep.subr.bf16.mxu1 %v4803_v25  ;;  %1851 = vmatprep.subr.bf16.mxu0 %v5508_v24  ;;  %v88_v23 = vld [vmem:[%s8344_s4 + $0x138] sm:$0xff]  ;;  %v4814_v24 = vcombine.low %v76_v13, %v80_v14  ;;  %v5533_v25 = vld [vmem:[%s8343_s3 + $0x160] ss:$16 sps:$4 sm:$0xff]   ;;  %v5594_v14 = vld [vmem:[%s8343_s3 + $0x2e4] ss:$16 sps:$4 sm:$0xff]  }
  0x8b   :  { %v4823_v27 = vcombine.high %v84_v22, %v88_v23  ;;  %v5589_v13 = vld [vmem:[%s8343_s3 + $0xc8] ss:$16 sps:$4 sm:$0xff]  }
  0x8d   :  { %521 = vmatpush1.bf16.msra.mxu1 %v4802_v28  ;;  %1852 = vmatpush1.bf16.msra.mxu0 %v5506_v29  ;;  %v92_v28 = vld [vmem:[%s8344_s4 + $0x158] sm:$0xff] }
  0x8e   :  { %522 = vmatprep.subr.bf16.mxu1 %v4811_v31  ;;  %1853 = vmatprep.subr.bf16.mxu0 %v5511_v30  ;;  %v96_v29 = vld [vmem:[%s8344_s4 + $0x178] sm:$0xff]  ;;  %v4822_v30 = vcombine.low %v84_v22, %v88_v23  ;;  %v5536_v31 = vld [vmem:[%s8343_s3 + $0x180] ss:$16 sps:$4 sm:$0xff]  }
  0x8f   :  { %v4831_v33 = vcombine.high %v92_v28, %v96_v29  ;;  %v5603_v22 = vld [vmem:[%s8343_s3 + $0x10c] ss:$16 sps:$4 sm:$0xff]   ;;  %v5598_v23 = vld [vmem:[%s8343_s3 + $0x300] ss:$16 sps:$4 sm:$0xff]  }
  0x91   :  { %523 = vmatpush1.bf16.msra.mxu1 %v4810_v34  ;;  %1854 = vmatpush1.bf16.msra.mxu0 %v5509_v35  ;;  %v100_v34 = vld [vmem:[%s8344_s4 + $0x198] sm:$0xff] }
  0x92   :  { %524 = vmatprep.subr.bf16.mxu1 %v4819_v37  ;;  %1855 = vmatprep.subr.bf16.mxu0 %v5514_v36  ;;  %v104_v35 = vld [vmem:[%s8344_s4 + $0x1b8] sm:$0xff]  ;;  %v4830_v36 = vcombine.low %v92_v28, %v96_v29  ;;  %v5539_v37 = vld [vmem:[%s8343_s3 + $0x1a0] ss:$16 sps:$4 sm:$0xff]   ;;  %v5612_v29 = vld [vmem:[%s8343_s3 + $0x344] ss:$16 sps:$4 sm:$0xff]  }
  0x93   :  { %v4839_v39 = vcombine.high %v100_v34, %v104_v35  ;;  %v5607_v28 = vld [vmem:[%s8343_s3 + $0x128] ss:$16 sps:$4 sm:$0xff]  }
  0x95   :  { %525 = vmatpush1.bf16.msra.mxu1 %v4818_v40  ;;  %1856 = vmatpush1.bf16.msra.mxu0 %v5512_v41  ;;  %v108_v40 = vld [vmem:[%s8344_s4 + $0x1d8] sm:$0xff] }
  0x96   :  { %526 = vmatprep.subr.bf16.mxu1 %v4827_v43  ;;  %1857 = vmatprep.subr.bf16.mxu0 %v5517_v42  ;;  %v112_v41 = vld [vmem:[%s8344_s4 + $0x1f8] sm:$0xff]  ;;  %v4838_v42 = vcombine.low %v100_v34, %v104_v35  ;;  %v5542_v43 = vld [vmem:[%s8343_s3 + $0x1c0] ss:$16 sps:$4 sm:$0xff]  }
  0x97   :  { %v4847_v44 = vcombine.high %v108_v40, %v112_v41  ;;  %v5621_v34 = vld [vmem:[%s8343_s3 + $0x16c] ss:$16 sps:$4 sm:$0xff]   ;;  %v5616_v35 = vld [vmem:[%s8343_s3 + $0x360] ss:$16 sps:$4 sm:$0xff]  }
  0x99   :  { %527 = vmatpush1.bf16.msra.mxu1 %v4826_v46  ;;  %1858 = vmatpush1.bf16.msra.mxu0 %v5515_v47  ;;  %v4846_v46 = vcombine.low %v108_v40, %v112_v41  ;;  %v5545_v47 = vld [vmem:[%s8343_s3 + $0x1e0] ss:$16 sps:$4 sm:$0xff]   ;;  %v5625_v40 = vld [vmem:[%s8343_s3 + $0x188] ss:$16 sps:$4 sm:$0xff]   ;;  %v5630_v41 = vld [vmem:[%s8343_s3 + $0x3a4] ss:$16 sps:$4 sm:$0xff]  }
  0x9a   :  { %528 = vmatprep.subr.bf16.mxu1 %v4835_v49  ;;  %1859 = vmatprep.subr.bf16.mxu0 %v5520_v48  ;;  %v5552_v48 = vld [vmem:[%s8343_s3 + $0x204] ss:$16 sps:$4 sm:$0xff]   ;;  %v5555_v49 = vld [vmem:[%s8343_s3 + $0xc] ss:$16 sps:$4 sm:$0xff]  }
  0x9d   :  { %529 = vmatpush1.bf16.msra.mxu1 %v4834_v52  ;;  %1860 = vmatpush1.bf16.msra.mxu0 %v5518_v53  ;;  %v6727_v52 = vcombine.low %v6511_v12, %v6511_v12  ;;  %v5558_v53 = vld [vmem:[%s8343_s3 + $0x224] ss:$16 sps:$4 sm:$0xff]   ;;  %v5556_v12 = vld [vmem:[%s8343_s3 + $0x220] ss:$16 sps:$4 sm:$0xff]  }
  0x9e   :  { %530 = vmatprep.subr.bf16.mxu1 %v4843_v55  ;;  %1861 = vmatprep.subr.bf16.mxu0 %v5523_v54  ;;  %v6735_v54 = vld [vmem:[%s8340_s0 + $0x8] sm:$0xff] }
  0x9f   :  { %v5561_v55 = vld [vmem:[%s8343_s3 + $0x2c] ss:$16 sps:$4 sm:$0xff]   ;;  %v6748_v57 = vcombine.high %v6735_v54, %v6735_v54 }
  0xa1   :  { %531 = vmatpush1.bf16.msra.mxu1 %v4842_v58  ;;  %1862 = vmatpush1.bf16.msra.mxu0 %v5521_v59  ;;  %v5564_v58 = vld [vmem:[%s8343_s3 + $0x244] ss:$16 sps:$4 sm:$0xff]   ;;  %v5567_v59 = vld [vmem:[%s8343_s3 + $0x4c] ss:$16 sps:$4 sm:$0xff]  }
  0xa2   :  { %598 = vmatprep.subr.bf16.mxu1 %v4791_v61  ;;  %1863 = vmatprep.subr.bf16.mxu0 %v5526_v60  ;;  %v5570_v60 = vld [vmem:[%s8343_s3 + $0x264] ss:$16 sps:$4 sm:$0xff]   ;;  %v5568_v61 = vld [vmem:[%s8343_s3 + $0x260] ss:$16 sps:$4 sm:$0xff]  }
  0xa4   :  { %4851 = vmatmul.mubr.msk.bf16.vlgmr.msra.gmra.mrb[4].mxu1 %vm6525_vm1, %v6320_v21 }
  0xa5   :  { %599 = vmatpush1.bf16.msra.mxu1 %v4790_v0  ;;  %1864 = vmatpush1.bf16.msra.mxu0 %v5524_v1  ;;  %v5579_v0 = vld [vmem:[%s8343_s3 + $0x8c] ss:$16 sps:$4 sm:$0xff]   ;;  %v5574_v1 = vld [vmem:[%s8343_s3 + $0x280] ss:$16 sps:$4 sm:$0xff]  }
  0xa6   :  { %600 = vmatprep.subr.bf16.mxu1 %v4799_v4  ;;  %1865 = vmatprep.subr.bf16.mxu0 %v5529_v2  ;;  %v5577_v2 = vld [vmem:[%s8343_s3 + $0x88] ss:$16 sps:$4 sm:$0xff]   ;;  %v5582_v4 = vld [vmem:[%s8343_s3 + $0x2a4] ss:$16 sps:$4 sm:$0xff]  }
  0xa7   :  { %630 = vmatprep.mubr.bf16.mxu1 %v6319_v3 }
  0xa9   :  { %601 = vmatpush1.bf16.msra.mxu1 %v4798_v7  ;;  %1866 = vmatpush1.bf16.msra.mxu0 %v5527_v9  ;;  %v5583_v7 = vld [vmem:[%s8343_s3 + $0xa8] ss:$16 sps:$4 sm:$0xff]   ;;  %v5588_v9 = vld [vmem:[%s8343_s3 + $0x2c4] ss:$16 sps:$4 sm:$0xff]  }
  0xaa   :  { %602 = vmatprep.subr.bf16.mxu1 %v4807_v11  ;;  %1867 = vmatprep.subr.bf16.mxu0 %v5532_v10  ;;  %v5591_v10 = vld [vmem:[%s8343_s3 + $0xcc] ss:$16 sps:$4 sm:$0xff]   ;;  %v5586_v11 = vld [vmem:[%s8343_s3 + $0x2c0] ss:$16 sps:$4 sm:$0xff]  }
  0xad   :  { %603 = vmatpush1.bf16.msra.mxu1 %v4806_v15  ;;  %1868 = vmatpush1.bf16.msra.mxu0 %v5530_v16  ;;  %v5597_v15 = vld [vmem:[%s8343_s3 + $0xec] ss:$16 sps:$4 sm:$0xff]   ;;  %v5592_v16 = vld [vmem:[%s8343_s3 + $0x2e0] ss:$16 sps:$4 sm:$0xff]  }
  0xae   :  { %604 = vmatprep.subr.bf16.mxu1 %v4815_v18  ;;  %1869 = vmatprep.subr.bf16.mxu0 %v5535_v17  ;;  %v5595_v17 = vld [vmem:[%s8343_s3 + $0xe8] ss:$16 sps:$4 sm:$0xff]   ;;  %v5600_v18 = vld [vmem:[%s8343_s3 + $0x304] ss:$16 sps:$4 sm:$0xff]  }
  0xb1   :  { %605 = vmatpush1.bf16.msra.mxu1 %v4814_v24  ;;  %1870 = vmatpush1.bf16.msra.mxu0 %v5533_v25  ;;  %v5601_v24 = vld [vmem:[%s8343_s3 + $0x108] ss:$16 sps:$4 sm:$0xff]   ;;  %v5606_v25 = vld [vmem:[%s8343_s3 + $0x324] ss:$16 sps:$4 sm:$0xff]  }
  0xb2   :  { %606 = vmatprep.subr.bf16.mxu1 %v4823_v27  ;;  %1871 = vmatprep.subr.bf16.mxu0 %v5538_v26  ;;  %v5609_v26 = vld [vmem:[%s8343_s3 + $0x12c] ss:$16 sps:$4 sm:$0xff]   ;;  %v5604_v27 = vld [vmem:[%s8343_s3 + $0x320] ss:$16 sps:$4 sm:$0xff]  }
  0xb5   :  { %607 = vmatpush1.bf16.msra.mxu1 %v4822_v30  ;;  %1872 = vmatpush1.bf16.msra.mxu0 %v5536_v31  ;;  %v5615_v30 = vld [vmem:[%s8343_s3 + $0x14c] ss:$16 sps:$4 sm:$0xff]   ;;  %v5610_v31 = vld [vmem:[%s8343_s3 + $0x340] ss:$16 sps:$4 sm:$0xff]  }
  0xb6   :  { %608 = vmatprep.subr.bf16.mxu1 %v4831_v33  ;;  %1873 = vmatprep.subr.bf16.mxu0 %v5541_v32  ;;  %v5613_v32 = vld [vmem:[%s8343_s3 + $0x148] ss:$16 sps:$4 sm:$0xff]   ;;  %v5618_v33 = vld [vmem:[%s8343_s3 + $0x364] ss:$16 sps:$4 sm:$0xff]  }
  0xb9   :  { %609 = vmatpush1.bf16.msra.mxu1 %v4830_v36  ;;  %1874 = vmatpush1.bf16.msra.mxu0 %v5539_v37  ;;  %v5619_v36 = vld [vmem:[%s8343_s3 + $0x168] ss:$16 sps:$4 sm:$0xff]   ;;  %v5624_v37 = vld [vmem:[%s8343_s3 + $0x384] ss:$16 sps:$4 sm:$0xff]  }
  0xba   :  { %610 = vmatprep.subr.bf16.mxu1 %v4839_v39  ;;  %1875 = vmatprep.subr.bf16.mxu0 %v5544_v38  ;;  %v5627_v38 = vld [vmem:[%s8343_s3 + $0x18c] ss:$16 sps:$4 sm:$0xff]   ;;  %v5622_v39 = vld [vmem:[%s8343_s3 + $0x380] ss:$16 sps:$4 sm:$0xff]  }
  0xbd   :  { %611 = vmatpush1.bf16.msra.mxu1 %v4838_v42  ;;  %1876 = vmatpush1.bf16.msra.mxu0 %v5542_v43  ;;  %v5633_v42 = vld [vmem:[%s8343_s3 + $0x1ac] ss:$16 sps:$4 sm:$0xff]   ;;  %v5628_v43 = vld [vmem:[%s8343_s3 + $0x3a0] ss:$16 sps:$4 sm:$0xff]  }
  0xbe   :  { %612 = vmatprep.subr.bf16.mxu1 %v4847_v44  ;;  %1877 = vmatprep.subr.bf16.mxu0 %v5547_v45  ;;  %v5631_v44 = vld [vmem:[%s8343_s3 + $0x1a8] ss:$16 sps:$4 sm:$0xff]   ;;  %v5636_v45 = vld [vmem:[%s8343_s3 + $0x3c4] ss:$16 sps:$4 sm:$0xff]  }
  0xc1   :  { %613 = vmatpush1.bf16.msra.mxu1 %v4846_v46  ;;  %1878 = vmatpush1.bf16.msra.mxu0 %v5545_v47  ;;  %v5639_v46 = vld [vmem:[%s8343_s3 + $0x1cc] ss:$16 sps:$4 sm:$0xff]   ;;  %v5634_v47 = vld [vmem:[%s8343_s3 + $0x3c0] ss:$16 sps:$4 sm:$0xff]  }
  0xc2   :  { %1888 = vmatprep.subr.bf16.mxu0 %v5552_v48  ;;  %2011 = vmatprep.subr.bf16.mxu1 %v5555_v49  ;;  %v5637_v48 = vld [vmem:[%s8343_s3 + $0x1c8] ss:$16 sps:$4 sm:$0xff]   ;;  %v5642_v49 = vld [vmem:[%s8343_s3 + $0x3e4] ss:$16 sps:$4 sm:$0xff]  }
  0xc4   :  { %4855 = vmatmul.mubr.msk.bf16.vlgmr.msra.gmra.mrb[8].mxu1 %vm6525_vm1, %v6320_v21  ;;  %1880 = vmatmul.mubr.bf16.vlgmr.msra.gmra.mrb[4].mxu0 %v6727_v52  ;;  %v5565_v21 = vld [vmem:[%s8343_s3 + $0x48] ss:$16 sps:$4 sm:$0xff]  }
  0xc5   :  { %1889 = vmatpush1.bf16.msra.mxu0 %v5550_v50  ;;  %2012 = vmatpush1.bf16.msra.mxu1 %v5553_v51  ;;  %v5645_v50 = vld [vmem:[%s8343_s3 + $0x1ec] ss:$16 sps:$4 sm:$0xff]   ;;  %v5640_v51 = vld [vmem:[%s8343_s3 + $0x3e0] ss:$16 sps:$4 sm:$0xff]  }
  0xc6   :  { %1890 = vmatprep.subr.bf16.mxu0 %v5558_v53  ;;  %2013 = vmatprep.subr.bf16.mxu1 %v5561_v55  ;;  %v5643_v53 = vld [vmem:[%s8343_s3 + $0x1e8] ss:$16 sps:$4 sm:$0xff]   ;;  %v5650_v55 = vld [vmem:[%s8343_s3 + $0x404] ss:$16 sps:$4 sm:$0xff]  }
  0xc7   :  { %1920 = vmatprep.mubr.bf16.mxu0 %v6748_v57  ;;  %2043 = vmatprep.mubr.bf16.mxu1 %v6531_v20  ;;  %v5573_v20 = vld [vmem:[%s8343_s3 + $0x6c] ss:$16 sps:$4 sm:$0xff]  }
  0xc9   :  { %1891 = vmatpush1.bf16.msra.mxu0 %v5556_v12  ;;  %2014 = vmatpush1.bf16.msra.mxu1 %v5559_v56  ;;  %v5653_v12 = vld [vmem:[%s8343_s3 + $0x20c] ss:$16 sps:$4 sm:$0xff]   ;;  %v6933_v56 = vld [vmem:[%s8340_s0 + $0x10] sm:$0xff] }
  0xca   :  { %1892 = vmatprep.subr.bf16.mxu0 %v5564_v58  ;;  %2015 = vmatprep.subr.bf16.mxu1 %v5567_v59  ;;  %v5648_v58 = vld [vmem:[%s8343_s3 + $0x400] ss:$16 sps:$4 sm:$0xff]   ;;  %v5651_v59 = vld [vmem:[%s8343_s3 + $0x208] ss:$16 sps:$4 sm:$0xff]  }
  0xcd   :  { %1893 = vmatpush1.bf16.msra.mxu0 %v5562_v19  ;;  %2016 = vmatpush1.bf16.msra.mxu1 %v5565_v21  ;;  %v6943_v19 = vcombine.low %v6735_v54, %v6735_v54  ;;  %v5656_v21 = vld [vmem:[%s8343_s3 + $0x424] ss:$16 sps:$4 sm:$0xff]   ;;  %v5657_v54 = vld [vmem:[%s8343_s3 + $0x228] ss:$16 sps:$4 sm:$0xff]  }
  0xce   :  { %1894 = vmatprep.subr.bf16.mxu0 %v5570_v60  ;;  %2017 = vmatprep.subr.bf16.mxu1 %v5573_v20  ;;  %v5659_v60 = vld [vmem:[%s8343_s3 + $0x22c] ss:$16 sps:$4 sm:$0xff]   ;;  %v5654_v20 = vld [vmem:[%s8343_s3 + $0x420] ss:$16 sps:$4 sm:$0xff]  }
  0xd1   :  { %1895 = vmatpush1.bf16.msra.mxu0 %v5568_v61  ;;  %2018 = vmatpush1.bf16.msra.mxu1 %v5571_v62  ;;  %v6959_v61 = vcombine.high %v6933_v56, %v6933_v56  ;;  %v5662_v62 = vld [vmem:[%s8343_s3 + $0x444] ss:$16 sps:$4 sm:$0xff]  }
  0xd2   :  { %1896 = vmatprep.subr.bf16.mxu0 %v5576_v63  ;;  %2019 = vmatprep.subr.bf16.mxu1 %v5579_v0  ;;  %v5665_v63 = vld [vmem:[%s8343_s3 + $0x24c] ss:$16 sps:$4 sm:$0xff]   ;;  %v5660_v0 = vld [vmem:[%s8343_s3 + $0x440] ss:$16 sps:$4 sm:$0xff]  }
  0xd5   :  { %1897 = vmatpush1.bf16.msra.mxu0 %v5574_v1  ;;  %2020 = vmatpush1.bf16.msra.mxu1 %v5577_v2  ;;  %v5668_v1 = vld [vmem:[%s8343_s3 + $0x464] ss:$16 sps:$4 sm:$0xff]   ;;  %v5671_v2 = vld [vmem:[%s8343_s3 + $0x26c] ss:$16 sps:$4 sm:$0xff]  }
  0xd6   :  { %1898 = vmatprep.subr.bf16.mxu0 %v5582_v4  ;;  %2021 = vmatprep.subr.bf16.mxu1 %v5585_v5  ;;  %v5666_v4 = vld [vmem:[%s8343_s3 + $0x460] ss:$16 sps:$4 sm:$0xff]   ;;  %v5674_v5 = vld [vmem:[%s8343_s3 + $0x484] ss:$16 sps:$4 sm:$0xff]  }
  0xd9   :  { %1899 = vmatpush1.bf16.msra.mxu0 %v5580_v6  ;;  %2022 = vmatpush1.bf16.msra.mxu1 %v5583_v7  ;;  %v5677_v6 = vld [vmem:[%s8343_s3 + $0x28c] ss:$16 sps:$4 sm:$0xff]   ;;  %v5672_v7 = vld [vmem:[%s8343_s3 + $0x480] ss:$16 sps:$4 sm:$0xff]  }
  0xda   :  { %1900 = vmatprep.subr.bf16.mxu0 %v5588_v9  ;;  %2023 = vmatprep.subr.bf16.mxu1 %v5591_v10  ;;  %v5675_v9 = vld [vmem:[%s8343_s3 + $0x288] ss:$16 sps:$4 sm:$0xff]   ;;  %v5680_v10 = vld [vmem:[%s8343_s3 + $0x4a4] ss:$16 sps:$4 sm:$0xff]  }
  0xdd   :  { %1901 = vmatpush1.bf16.msra.mxu0 %v5586_v11  ;;  %2024 = vmatpush1.bf16.msra.mxu1 %v5589_v13  ;;  %v5683_v11 = vld [vmem:[%s8343_s3 + $0x2ac] ss:$16 sps:$4 sm:$0xff]   ;;  %v5678_v13 = vld [vmem:[%s8343_s3 + $0x4a0] ss:$16 sps:$4 sm:$0xff]  }
  0xde   :  { %1902 = vmatprep.subr.bf16.mxu0 %v5594_v14  ;;  %2025 = vmatprep.subr.bf16.mxu1 %v5597_v15  ;;  %v5681_v14 = vld [vmem:[%s8343_s3 + $0x2a8] ss:$16 sps:$4 sm:$0xff]   ;;  %v5686_v15 = vld [vmem:[%s8343_s3 + $0x4c4] ss:$16 sps:$4 sm:$0xff]  }
  0xe1   :  { %1903 = vmatpush1.bf16.msra.mxu0 %v5592_v16  ;;  %2026 = vmatpush1.bf16.msra.mxu1 %v5595_v17  ;;  %v5689_v16 = vld [vmem:[%s8343_s3 + $0x2cc] ss:$16 sps:$4 sm:$0xff]   ;;  %v5684_v17 = vld [vmem:[%s8343_s3 + $0x4c0] ss:$16 sps:$4 sm:$0xff]  }
  0xe2   :  { %1904 = vmatprep.subr.bf16.mxu0 %v5600_v18  ;;  %2027 = vmatprep.subr.bf16.mxu1 %v5603_v22  ;;  %v5687_v18 = vld [vmem:[%s8343_s3 + $0x2c8] ss:$16 sps:$4 sm:$0xff]  }
  0xe5   :  { %1905 = vmatpush1.bf16.msra.mxu0 %v5598_v23  ;;  %2028 = vmatpush1.bf16.msra.mxu1 %v5601_v24 }
  0xe6   :  { %1906 = vmatprep.subr.bf16.mxu0 %v5606_v25  ;;  %2029 = vmatprep.subr.bf16.mxu1 %v5609_v26 }
  0xe9   :  { %1907 = vmatpush1.bf16.msra.mxu0 %v5604_v27  ;;  %2030 = vmatpush1.bf16.msra.mxu1 %v5607_v28 }
  0xea   :  { %1908 = vmatprep.subr.bf16.mxu0 %v5612_v29  ;;  %2031 = vmatprep.subr.bf16.mxu1 %v5615_v30 }
  0xed   :  { %1909 = vmatpush1.bf16.msra.mxu0 %v5610_v31  ;;  %2032 = vmatpush1.bf16.msra.mxu1 %v5613_v32 }
  0xee   :  { %1910 = vmatprep.subr.bf16.mxu0 %v5618_v33  ;;  %2033 = vmatprep.subr.bf16.mxu1 %v5621_v34 }
  0xf1   :  { %1911 = vmatpush1.bf16.msra.mxu0 %v5616_v35  ;;  %2034 = vmatpush1.bf16.msra.mxu1 %v5619_v36 }
  0xf2   :  { %1912 = vmatprep.subr.bf16.mxu0 %v5624_v37  ;;  %2035 = vmatprep.subr.bf16.mxu1 %v5627_v38 }
  0xf5   :  { %1913 = vmatpush1.bf16.msra.mxu0 %v5622_v39  ;;  %2036 = vmatpush1.bf16.msra.mxu1 %v5625_v40 }
  0xf6   :  { %1914 = vmatprep.subr.bf16.mxu0 %v5630_v41  ;;  %2037 = vmatprep.subr.bf16.mxu1 %v5633_v42 }
  0xf9   :  { %1915 = vmatpush1.bf16.msra.mxu0 %v5628_v43  ;;  %2038 = vmatpush1.bf16.msra.mxu1 %v5631_v44 }
  0xfa   :  { %1916 = vmatprep.subr.bf16.mxu0 %v5636_v45  ;;  %2039 = vmatprep.subr.bf16.mxu1 %v5639_v46 }
  0xfd   :  { %1917 = vmatpush1.bf16.msra.mxu0 %v5634_v47  ;;  %2040 = vmatpush1.bf16.msra.mxu1 %v5637_v48 }
  0xfe   :  { %1918 = vmatprep.subr.bf16.mxu0 %v5642_v49  ;;  %2041 = vmatprep.subr.bf16.mxu1 %v5645_v50 }
 0x101   :  { %1919 = vmatpush1.bf16.msra.mxu0 %v5640_v51  ;;  %2042 = vmatpush1.bf16.msra.mxu1 %v5643_v53 }
 0x102   :  { %1929 = vmatprep.subr.bf16.mxu0 %v5650_v55  ;;  %2052 = vmatprep.subr.bf16.mxu1 %v5653_v12 }
 0x104   :  { %1921 = vmatmul.mubr.bf16.vlgmr.msra.gmra.mrb[4].mxu0 %v6943_v19  ;;  %2044 = vmatmul.mubr.bf16.vlgmr.msra.gmra.mrb[4].mxu1 %v6727_v52  ;;  %v5663_v52 = vld [vmem:[%s8343_s3 + $0x248] ss:$16 sps:$4 sm:$0xff]  }
 0x105   :  { %1930 = vmatpush1.bf16.msra.mxu0 %v5648_v58  ;;  %2053 = vmatpush1.bf16.msra.mxu1 %v5651_v59 }
 0x106   :  { %1931 = vmatprep.subr.bf16.mxu0 %v5656_v21  ;;  %2054 = vmatprep.subr.bf16.mxu1 %v5659_v60 }
 0x107   :  { %1961 = vmatprep.mubr.bf16.mxu0 %v6959_v61  ;;  %2084 = vmatprep.mubr.bf16.mxu1 %v6748_v57  ;;  %v5669_v57 = vld [vmem:[%s8343_s3 + $0x268] ss:$16 sps:$4 sm:$0xff]  }
 0x109   :  { %1932 = vmatpush1.bf16.msra.mxu0 %v5654_v20  ;;  %2055 = vmatpush1.bf16.msra.mxu1 %v5657_v54 }
 0x10a   :  { %1933 = vmatprep.subr.bf16.mxu0 %v5662_v62  ;;  %2056 = vmatprep.subr.bf16.mxu1 %v5665_v63 }
 0x10d   :  { %1934 = vmatpush1.bf16.msra.mxu0 %v5660_v0  ;;  %2057 = vmatpush1.bf16.msra.mxu1 %v5663_v52 }
 0x10e   :  { %1935 = vmatprep.subr.bf16.mxu0 %v5668_v1  ;;  %2058 = vmatprep.subr.bf16.mxu1 %v5671_v2 }
 0x111   :  { %1936 = vmatpush1.bf16.msra.mxu0 %v5666_v4  ;;  %2059 = vmatpush1.bf16.msra.mxu1 %v5669_v57 }
 0x112   :  { %1937 = vmatprep.subr.bf16.mxu0 %v5674_v5  ;;  %2060 = vmatprep.subr.bf16.mxu1 %v5677_v6 }
 0x115   :  { %1938 = vmatpush1.bf16.msra.mxu0 %v5672_v7  ;;  %2061 = vmatpush1.bf16.msra.mxu1 %v5675_v9 }
 0x116   :  { %1939 = vmatprep.subr.bf16.mxu0 %v5680_v10  ;;  %2062 = vmatprep.subr.bf16.mxu1 %v5683_v11 }
 0x119   :  { %1940 = vmatpush1.bf16.msra.mxu0 %v5678_v13  ;;  %2063 = vmatpush1.bf16.msra.mxu1 %v5681_v14 }
 0x11a   :  { %16 = vsyncpa [#allocation3], 0  ;;  %1941 = vmatprep.subr.bf16.mxu0 %v5686_v15  ;;  %2064 = vmatprep.subr.bf16.mxu1 %v5689_v16  ;;  %v5692_v22 = vld [vmem:[%s8343_s3 + $0x4e4] ss:$16 sps:$4 sm:$0xff]   ;;  %v5695_v23 = vld [vmem:[%s8343_s3 + $0x2ec] ss:$16 sps:$4 sm:$0xff]   ;;  %v7141_v54 = vcombine.low %v6933_v56, %v6933_v56 }
 0x11b   :  { %v5690_v24 = vld [vmem:[%s8343_s3 + $0x4e0] ss:$16 sps:$4 sm:$0xff]   ;;  %v5693_v25 = vld [vmem:[%s8343_s3 + $0x2e8] ss:$16 sps:$4 sm:$0xff]   ;;  %v5698_v26 = vld [vmem:[%s8343_s3 + $0x504] ss:$16 sps:$4 sm:$0xff]  }
 0x11c   :  { %v5701_v27 = vld [vmem:[%s8343_s3 + $0x30c] ss:$16 sps:$4 sm:$0xff]   ;;  %v5696_v28 = vld [vmem:[%s8343_s3 + $0x500] ss:$16 sps:$4 sm:$0xff]   ;;  %v5699_v29 = vld [vmem:[%s8343_s3 + $0x308] ss:$16 sps:$4 sm:$0xff]  }
 0x11d   :  { %1942 = vmatpush1.bf16.msra.mxu0 %v5684_v17  ;;  %2065 = vmatpush1.bf16.msra.mxu1 %v5687_v18  ;;  %v5704_v30 = vld [vmem:[%s8343_s3 + $0x524] ss:$16 sps:$4 sm:$0xff]   ;;  %v5707_v31 = vld [vmem:[%s8343_s3 + $0x32c] ss:$16 sps:$4 sm:$0xff]   ;;  %v5702_v32 = vld [vmem:[%s8343_s3 + $0x520] ss:$16 sps:$4 sm:$0xff]  }
 0x11e   :  { %1943 = vmatprep.subr.bf16.mxu0 %v5692_v22  ;;  %2066 = vmatprep.subr.bf16.mxu1 %v5695_v23  ;;  %v5705_v33 = vld [vmem:[%s8343_s3 + $0x328] ss:$16 sps:$4 sm:$0xff]   ;;  %v5710_v34 = vld [vmem:[%s8343_s3 + $0x544] ss:$16 sps:$4 sm:$0xff]   ;;  %v5713_v35 = vld [vmem:[%s8343_s3 + $0x34c] ss:$16 sps:$4 sm:$0xff]  }
 0x11f   :  { %v5708_v36 = vld [vmem:[%s8343_s3 + $0x540] ss:$16 sps:$4 sm:$0xff]   ;;  %v5711_v37 = vld [vmem:[%s8343_s3 + $0x348] ss:$16 sps:$4 sm:$0xff]   ;;  %v5716_v38 = vld [vmem:[%s8343_s3 + $0x564] ss:$16 sps:$4 sm:$0xff]  }
 0x120   :  { %v5719_v39 = vld [vmem:[%s8343_s3 + $0x36c] ss:$16 sps:$4 sm:$0xff]   ;;  %v5714_v40 = vld [vmem:[%s8343_s3 + $0x560] ss:$16 sps:$4 sm:$0xff]   ;;  %v5717_v41 = vld [vmem:[%s8343_s3 + $0x368] ss:$16 sps:$4 sm:$0xff]  }
 0x121   :  { %1944 = vmatpush1.bf16.msra.mxu0 %v5690_v24  ;;  %2067 = vmatpush1.bf16.msra.mxu1 %v5693_v25  ;;  %v5722_v42 = vld [vmem:[%s8343_s3 + $0x584] ss:$16 sps:$4 sm:$0xff]   ;;  %v5725_v43 = vld [vmem:[%s8343_s3 + $0x38c] ss:$16 sps:$4 sm:$0xff]   ;;  %v5720_v44 = vld [vmem:[%s8343_s3 + $0x580] ss:$16 sps:$4 sm:$0xff]  }
 0x122   :  { %1945 = vmatprep.subr.bf16.mxu0 %v5698_v26  ;;  %2068 = vmatprep.subr.bf16.mxu1 %v5701_v27  ;;  %v5723_v45 = vld [vmem:[%s8343_s3 + $0x388] ss:$16 sps:$4 sm:$0xff]   ;;  %v5728_v46 = vld [vmem:[%s8343_s3 + $0x5a4] ss:$16 sps:$4 sm:$0xff]   ;;  %v5731_v47 = vld [vmem:[%s8343_s3 + $0x3ac] ss:$16 sps:$4 sm:$0xff]  }
 0x123   :  { %v5726_v48 = vld [vmem:[%s8343_s3 + $0x5a0] ss:$16 sps:$4 sm:$0xff]   ;;  %v5729_v49 = vld [vmem:[%s8343_s3 + $0x3a8] ss:$16 sps:$4 sm:$0xff]   ;;  %v5734_v50 = vld [vmem:[%s8343_s3 + $0x5c4] ss:$16 sps:$4 sm:$0xff]  }
 0x124   :  { %v5737_v51 = vld [vmem:[%s8343_s3 + $0x3cc] ss:$16 sps:$4 sm:$0xff]   ;;  %v5732_v53 = vld [vmem:[%s8343_s3 + $0x5c0] ss:$16 sps:$4 sm:$0xff]   ;;  %v5735_v55 = vld [vmem:[%s8343_s3 + $0x3c8] ss:$16 sps:$4 sm:$0xff]  }
 0x125   :  { %1946 = vmatpush1.bf16.msra.mxu0 %v5696_v28  ;;  %2069 = vmatpush1.bf16.msra.mxu1 %v5699_v29  ;;  %v5740_v12 = vld [vmem:[%s8343_s3 + $0x5e4] ss:$16 sps:$4 sm:$0xff]   ;;  %v5743_v58 = vld [vmem:[%s8343_s3 + $0x3ec] ss:$16 sps:$4 sm:$0xff]   ;;  %v5738_v59 = vld [vmem:[%s8343_s3 + $0x5e0] ss:$16 sps:$4 sm:$0xff]  }
 0x126   :  { %1947 = vmatprep.subr.bf16.mxu0 %v5704_v30  ;;  %2070 = vmatprep.subr.bf16.mxu1 %v5707_v31  ;;  %v5741_v21 = vld [vmem:[%s8343_s3 + $0x3e8] ss:$16 sps:$4 sm:$0xff]   ;;  %v5748_v60 = vld [vmem:[%s8343_s3 + $0x40c] ss:$16 sps:$4 sm:$0xff]   ;;  %v5754_v20 = vld [vmem:[%s8343_s3 + $0x604] ss:$16 sps:$4 sm:$0xff]  }
 0x127   :  { %v5746_v62 = vld [vmem:[%s8343_s3 + $0x408] ss:$16 sps:$4 sm:$0xff]   ;;  %v5752_v63 = vld [vmem:[%s8343_s3 + $0x600] ss:$16 sps:$4 sm:$0xff]   ;;  %v5751_v0 = vld [vmem:[%s8343_s3 + $0x42c] ss:$16 sps:$4 sm:$0xff]  }
 0x128   :  { %v5803_v56 = vld [vmem:[%s8346_s6 + $0x4] ss:$8 sps:$4 sm:$0xff]   ;;  %v5749_v52 = vld [vmem:[%s8343_s3 + $0x428] ss:$16 sps:$4 sm:$0xff]   ;;  %vm1843_vm2 = vcmask 130048  }
 0x129   :  { %1948 = vmatpush1.bf16.msra.mxu0 %v5702_v32  ;;  %2071 = vmatpush1.bf16.msra.mxu1 %v5705_v33  ;;  %v5757_v1 = vld [vmem:[%s8343_s3 + $0x44c] ss:$16 sps:$4 sm:$0xff]   ;;  %v7174_v4 = vld [vmem:[%s8340_s0 + $0x18] ss:$0 sps:$4 sm:$0xff]   ;;  %v5801_v57 = vld [vmem:[%s8346_s6] ss:$8 sps:$4 sm:$0xff]  }
 0x12a   :  { %1949 = vmatprep.subr.bf16.mxu0 %v5710_v34  ;;  %2072 = vmatprep.subr.bf16.mxu1 %v5713_v35  ;;  %v5761_v2 = vld [vmem:[%s8343_s3 + $0x46c] ss:$16 sps:$4 sm:$0xff]   ;;  %v5762_v7 = vld [vmem:[%s8343_s3 + $0x488] ss:$16 sps:$4 sm:$0xff]  }
 0x12b   :  { %v5764_v5 = vld [vmem:[%s8343_s3 + $0x48c] ss:$16 sps:$4 sm:$0xff]   ;;  %v5804_v9 = vld [vmem:[%s8346_s6 + $0x10] ss:$8 sps:$4 sm:$0xff]   ;;  %v5807_v14 = vld [vmem:[%s8346_s6 + $0x20] ss:$8 sps:$4 sm:$0xff]  }
 0x12c   :  { %v5806_v6 = vld [vmem:[%s8346_s6 + $0x14] ss:$8 sps:$4 sm:$0xff]   ;;  %v5809_v11 = vld [vmem:[%s8346_s6 + $0x24] ss:$8 sps:$4 sm:$0xff]   ;;  %v5765_v13 = vld [vmem:[%s8343_s3 + $0x4a8] ss:$16 sps:$4 sm:$0xff]  }
 0x12d   :  { %1950 = vmatpush1.bf16.msra.mxu0 %v5708_v36  ;;  %2073 = vmatpush1.bf16.msra.mxu1 %v5711_v37  ;;  %v5767_v10 = vld [vmem:[%s8343_s3 + $0x4ac] ss:$16 sps:$4 sm:$0xff]   ;;  %v5768_v23 = vld [vmem:[%s8343_s3 + $0x4c8] ss:$16 sps:$4 sm:$0xff]  }
 0x12e   :  { %1951 = vmatprep.subr.bf16.mxu0 %v5716_v38  ;;  %2074 = vmatprep.subr.bf16.mxu1 %v5719_v39  ;;  %v5770_v15 = vld [vmem:[%s8343_s3 + $0x4cc] ss:$16 sps:$4 sm:$0xff]   ;;  %v5810_v24 = vld [vmem:[%s8346_s6 + $0x30] ss:$8 sps:$4 sm:$0xff]   ;;  %v5813_v29 = vld [vmem:[%s8346_s6 + $0x40] ss:$8 sps:$4 sm:$0xff]  }
 0x12f   :  { %v5812_v16 = vld [vmem:[%s8346_s6 + $0x34] ss:$8 sps:$4 sm:$0xff]   ;;  %v5815_v27 = vld [vmem:[%s8346_s6 + $0x44] ss:$8 sps:$4 sm:$0xff]   ;;  %v5771_v28 = vld [vmem:[%s8343_s3 + $0x4e8] ss:$16 sps:$4 sm:$0xff]  }
 0x130   :  { %v5773_v26 = vld [vmem:[%s8343_s3 + $0x4ec] ss:$16 sps:$4 sm:$0xff]   ;;  %v5774_v32 = vld [vmem:[%s8343_s3 + $0x508] ss:$16 sps:$4 sm:$0xff]  }
 0x131   :  { %1952 = vmatpush1.bf16.msra.mxu0 %v5714_v40  ;;  %2075 = vmatpush1.bf16.msra.mxu1 %v5717_v41  ;;  %v5776_v30 = vld [vmem:[%s8343_s3 + $0x50c] ss:$16 sps:$4 sm:$0xff]   ;;  %v5816_v33 = vld [vmem:[%s8346_s6 + $0x50] ss:$8 sps:$4 sm:$0xff]   ;;  %v5819_v37 = vld [vmem:[%s8346_s6 + $0x60] ss:$8 sps:$4 sm:$0xff]  }
 0x132   :  { %1953 = vmatprep.subr.bf16.mxu0 %v5722_v42  ;;  %2076 = vmatprep.subr.bf16.mxu1 %v5725_v43  ;;  %v5818_v31 = vld [vmem:[%s8346_s6 + $0x54] ss:$8 sps:$4 sm:$0xff]   ;;  %v5821_v35 = vld [vmem:[%s8346_s6 + $0x64] ss:$8 sps:$4 sm:$0xff]   ;;  %v5777_v36 = vld [vmem:[%s8343_s3 + $0x528] ss:$16 sps:$4 sm:$0xff]  }
 0x133   :  { %v5779_v34 = vld [vmem:[%s8343_s3 + $0x52c] ss:$16 sps:$4 sm:$0xff]   ;;  %v5780_v40 = vld [vmem:[%s8343_s3 + $0x548] ss:$16 sps:$4 sm:$0xff]  }
 0x134   :  { %v5782_v38 = vld [vmem:[%s8343_s3 + $0x54c] ss:$16 sps:$4 sm:$0xff]   ;;  %v5822_v41 = vld [vmem:[%s8346_s6 + $0x70] ss:$8 sps:$4 sm:$0xff]  }
 0x135   :  { %1954 = vmatpush1.bf16.msra.mxu0 %v5720_v44  ;;  %2077 = vmatpush1.bf16.msra.mxu1 %v5723_v45  ;;  %v5824_v39 = vld [vmem:[%s8346_s6 + $0x74] ss:$8 sps:$4 sm:$0xff]   ;;  %v5827_v43 = vld [vmem:[%s8346_s6 + $0x84] ss:$8 sps:$4 sm:$0xff]   ;;  %v5783_v44 = vld [vmem:[%s8343_s3 + $0x568] ss:$16 sps:$4 sm:$0xff]  }
 0x136   :  { %1955 = vmatprep.subr.bf16.mxu0 %v5728_v46  ;;  %2078 = vmatprep.subr.bf16.mxu1 %v5731_v47  ;;  %v5785_v42 = vld [vmem:[%s8343_s3 + $0x56c] ss:$16 sps:$4 sm:$0xff]   ;;  %v5825_v45 = vld [vmem:[%s8346_s6 + $0x80] ss:$8 sps:$4 sm:$0xff]  }
 0x137   :  { %v5788_v46 = vld [vmem:[%s8343_s3 + $0x58c] ss:$16 sps:$4 sm:$0xff]  }
 0x138   :  { %v5830_v47 = vld [vmem:[%s8346_s6 + $0x94] ss:$8 sps:$4 sm:$0xff]  }
 0x139   :  { %1956 = vmatpush1.bf16.msra.mxu0 %v5726_v48  ;;  %2079 = vmatpush1.bf16.msra.mxu1 %v5729_v49  ;;  %v5786_v48 = vld [vmem:[%s8343_s3 + $0x588] ss:$16 sps:$4 sm:$0xff]  }
 0x13a   :  { %1957 = vmatprep.subr.bf16.mxu0 %v5734_v50  ;;  %2080 = vmatprep.subr.bf16.mxu1 %v5737_v51  ;;  %v5828_v49 = vld [vmem:[%s8346_s6 + $0x90] ss:$8 sps:$4 sm:$0xff]   ;;  %v5791_v50 = vld [vmem:[%s8343_s3 + $0x5ac] ss:$16 sps:$4 sm:$0xff]  }
 0x13b   :  { %v5833_v51 = vld [vmem:[%s8346_s6 + $0xa4] ss:$8 sps:$4 sm:$0xff]  }
 0x13d   :  { %1958 = vmatpush1.bf16.msra.mxu0 %v5732_v53  ;;  %2081 = vmatpush1.bf16.msra.mxu1 %v5735_v55  ;;  %v5789_v53 = vld [vmem:[%s8343_s3 + $0x5a8] ss:$16 sps:$4 sm:$0xff]  }
 0x13e   :  { %1959 = vmatprep.subr.bf16.mxu0 %v5740_v12  ;;  %2082 = vmatprep.subr.bf16.mxu1 %v5743_v58  ;;  %v5831_v55 = vld [vmem:[%s8346_s6 + $0xa0] ss:$8 sps:$4 sm:$0xff]   ;;  %v5794_v12 = vld [vmem:[%s8343_s3 + $0x5cc] ss:$16 sps:$4 sm:$0xff]  }
 0x13f   :  { %v5836_v58 = vld [vmem:[%s8346_s6 + $0xb4] ss:$8 sps:$4 sm:$0xff]  }
 0x141   :  { %1960 = vmatpush1.bf16.msra.mxu0 %v5738_v59  ;;  %2083 = vmatpush1.bf16.msra.mxu1 %v5741_v21  ;;  %v5792_v59 = vld [vmem:[%s8343_s3 + $0x5c8] ss:$16 sps:$4 sm:$0xff]  }
 0x142   :  { %2093 = vmatprep.subr.bf16.mxu1 %v5748_v60  ;;  %1970 = vmatprep.subr.bf16.mxu0 %v5754_v20  ;;  %v5834_v21 = vld [vmem:[%s8346_s6 + $0xb0] ss:$8 sps:$4 sm:$0xff]   ;;  %v5797_v60 = vld [vmem:[%s8343_s3 + $0x5ec] ss:$16 sps:$4 sm:$0xff]  }
 0x143   :  { %v5839_v20 = vld [vmem:[%s8346_s6 + $0xc4] ss:$8 sps:$4 sm:$0xff]  }
 0x144   :  { %1962 = vmatmul.mubr.bf16.vlgmr.msra.gmra.mrb[4].mxu0 %v7141_v54  ;;  %2085 = vmatmul.mubr.bf16.vlgmr.msra.gmra.mrb[4].mxu1 %v6943_v19  ;;  %v5755_v19 = vld [vmem:[%s8343_s3 + $0x448] ss:$16 sps:$4 sm:$0xff]  }
 0x145   :  { %2094 = vmatpush1.bf16.msra.mxu1 %v5746_v62  ;;  %1971 = vmatpush1.bf16.msra.mxu0 %v5752_v63  ;;  %v5795_v62 = vld [vmem:[%s8343_s3 + $0x5e8] ss:$16 sps:$4 sm:$0xff]  }
 0x146   :  { %2095 = vmatprep.subr.bf16.mxu1 %v5751_v0  ;;  %2002 = vmatprep.mubr.bf16.mxu0 %v6319_v3  ;;  %v5837_v63 = vld [vmem:[%s8346_s6 + $0xc0] ss:$8 sps:$4 sm:$0xff]   ;;  %v5800_v0 = vld [vmem:[%s8343_s3 + $0x60c] ss:$16 sps:$4 sm:$0xff]  }
 0x147   :  { %2125 = vmatprep.mubr.bf16.mxu1 %v6959_v61  ;;  %2579 = vmatprep.subr.bf16.mxu0 %v5803_v56  ;;  %v5759_v61 = vld [vmem:[%s8343_s3 + $0x468] ss:$16 sps:$4 sm:$0xff]   ;;  %v5842_v56 = vld [vmem:[%s8346_s6 + $0xd4] ss:$8 sps:$4 sm:$0xff]  }
 0x149   :  { %2096 = vmatpush1.bf16.msra.mxu1 %v5749_v52  ;;  %v5798_v52 = vld [vmem:[%s8343_s3 + $0x608] ss:$16 sps:$4 sm:$0xff]  }
 0x14a   :  { %2097 = vmatprep.subr.bf16.mxu1 %v5757_v1  ;;  %v5840_v1 = vld [vmem:[%s8346_s6 + $0xd0] ss:$8 sps:$4 sm:$0xff]  }
 0x14d   :  { %2098 = vmatpush1.bf16.msra.mxu1 %v5755_v19  ;;  %v5845_v19 = vld [vmem:[%s8346_s6 + $0xe4] ss:$8 sps:$4 sm:$0xff]  }
 0x14e   :  { %2099 = vmatprep.subr.bf16.mxu1 %v5761_v2  ;;  %v5843_v2 = vld [vmem:[%s8346_s6 + $0xe0] ss:$8 sps:$4 sm:$0xff]  }
 0x150   :  { %5059 = vmatmul.mubr.msk.bf16.vlgmr.msra.gmra.mrb[4].mxu0 %vm1843_vm2, %v7174_v4 }
 0x151   :  { %2100 = vmatpush1.bf16.msra.mxu1 %v5759_v61  ;;  %2580 = vmatpush1.bf16.msra.mxu0 %v5801_v57  ;;  %v5846_v61 = vld [vmem:[%s8346_s6 + $0xf0] ss:$8 sps:$4 sm:$0xff]   ;;  %v5849_v57 = vld [vmem:[%s8346_s6 + $0x100] ss:$8 sps:$4 sm:$0xff]  }
 0x152   :  { %2101 = vmatprep.subr.bf16.mxu1 %v5764_v5  ;;  %2581 = vmatprep.subr.bf16.mxu0 %v5806_v6  ;;  %v5854_v5 = vld [vmem:[%s8346_s6 + $0x114] ss:$8 sps:$4 sm:$0xff]   ;;  %v5852_v6 = vld [vmem:[%s8346_s6 + $0x110] ss:$8 sps:$4 sm:$0xff]  }
 0x155   :  { %2102 = vmatpush1.bf16.msra.mxu1 %v5762_v7  ;;  %2582 = vmatpush1.bf16.msra.mxu0 %v5804_v9  ;;  %v5857_v7 = vld [vmem:[%s8346_s6 + $0x124] ss:$8 sps:$4 sm:$0xff]   ;;  %v5855_v9 = vld [vmem:[%s8346_s6 + $0x120] ss:$8 sps:$4 sm:$0xff]  }
 0x156   :  { %2103 = vmatprep.subr.bf16.mxu1 %v5767_v10  ;;  %2583 = vmatprep.subr.bf16.mxu0 %v5809_v11  ;;  %v5860_v10 = vld [vmem:[%s8346_s6 + $0x134] ss:$8 sps:$4 sm:$0xff]   ;;  %v5858_v11 = vld [vmem:[%s8346_s6 + $0x130] ss:$8 sps:$4 sm:$0xff]  }
 0x157   :  { %v7214_v17 = vpop.f32.mrb[0].mxu1 }
 0x158   :  { %v7216_v18 = vpop.f32.mrb[1].mxu1 }
 0x159   :  { %2104 = vmatpush1.bf16.msra.mxu1 %v5765_v13  ;;  %v513_v22 = vpop.f32.mrb[2].mxu1  ;;  %2584 = vmatpush1.bf16.msra.mxu0 %v5807_v14  ;;  %v5863_v13 = vld [vmem:[%s8346_s6 + $0x144] ss:$8 sps:$4 sm:$0xff]   ;;  %v5861_v14 = vld [vmem:[%s8346_s6 + $0x140] ss:$8 sps:$4 sm:$0xff]  }
 0x15a   :  { %v514_v25 = vpop.f32.mrb[3].mxu1  ;;  %2105 = vmatprep.subr.bf16.mxu1 %v5770_v15  ;;  %2585 = vmatprep.subr.bf16.mxu0 %v5812_v16  ;;  %v5866_v15 = vld [vmem:[%s8346_s6 + $0x154] ss:$8 sps:$4 sm:$0xff]   ;;  %v5864_v16 = vld [vmem:[%s8346_s6 + $0x150] ss:$8 sps:$4 sm:$0xff]  }
 0x15b   :  { %v5869_v22 = vld [vmem:[%s8346_s6 + $0x164] ss:$8 sps:$4 sm:$0xff]   ;;  %v5870_v25 = vld [vmem:[%s8346_s6 + $0x170] ss:$8 sps:$4 sm:$0xff]  }
 0x15d   :  { %2106 = vmatpush1.bf16.msra.mxu1 %v5768_v23  ;;  %2586 = vmatpush1.bf16.msra.mxu0 %v5810_v24  ;;  %v5867_v23 = vld [vmem:[%s8346_s6 + $0x160] ss:$8 sps:$4 sm:$0xff]   ;;  %v5872_v24 = vld [vmem:[%s8346_s6 + $0x174] ss:$8 sps:$4 sm:$0xff]  }
 0x15e   :  { %2107 = vmatprep.subr.bf16.mxu1 %v5773_v26  ;;  %2587 = vmatprep.subr.bf16.mxu0 %v5815_v27  ;;  %v5875_v26 = vld [vmem:[%s8346_s6 + $0x184] ss:$8 sps:$4 sm:$0xff]   ;;  %v5873_v27 = vld [vmem:[%s8346_s6 + $0x180] ss:$8 sps:$4 sm:$0xff]  }
 0x161   :  { %2108 = vmatpush1.bf16.msra.mxu1 %v5771_v28  ;;  %2588 = vmatpush1.bf16.msra.mxu0 %v5813_v29  ;;  %v5878_v28 = vld [vmem:[%s8346_s6 + $0x194] ss:$8 sps:$4 sm:$0xff]   ;;  %v5876_v29 = vld [vmem:[%s8346_s6 + $0x190] ss:$8 sps:$4 sm:$0xff]  }
 0x162   :  { %2109 = vmatprep.subr.bf16.mxu1 %v5776_v30  ;;  %2589 = vmatprep.subr.bf16.mxu0 %v5818_v31  ;;  %v5881_v30 = vld [vmem:[%s8346_s6 + $0x1a4] ss:$8 sps:$4 sm:$0xff]   ;;  %v5879_v31 = vld [vmem:[%s8346_s6 + $0x1a0] ss:$8 sps:$4 sm:$0xff]  }
 0x165   :  { %2110 = vmatpush1.bf16.msra.mxu1 %v5774_v32  ;;  %2590 = vmatpush1.bf16.msra.mxu0 %v5816_v33  ;;  %v5884_v32 = vld [vmem:[%s8346_s6 + $0x1b4] ss:$8 sps:$4 sm:$0xff]   ;;  %v5882_v33 = vld [vmem:[%s8346_s6 + $0x1b0] ss:$8 sps:$4 sm:$0xff]  }
 0x166   :  { %2111 = vmatprep.subr.bf16.mxu1 %v5779_v34  ;;  %2591 = vmatprep.subr.bf16.mxu0 %v5821_v35  ;;  %v5887_v34 = vld [vmem:[%s8346_s6 + $0x1c4] ss:$8 sps:$4 sm:$0xff]   ;;  %v5885_v35 = vld [vmem:[%s8346_s6 + $0x1c0] ss:$8 sps:$4 sm:$0xff]  }
 0x169   :  { %2112 = vmatpush1.bf16.msra.mxu1 %v5777_v36  ;;  %2592 = vmatpush1.bf16.msra.mxu0 %v5819_v37  ;;  %v5890_v36 = vld [vmem:[%s8346_s6 + $0x1d4] ss:$8 sps:$4 sm:$0xff]   ;;  %v5888_v37 = vld [vmem:[%s8346_s6 + $0x1d0] ss:$8 sps:$4 sm:$0xff]  }
 0x16a   :  { %2113 = vmatprep.subr.bf16.mxu1 %v5782_v38  ;;  %2593 = vmatprep.subr.bf16.mxu0 %v5824_v39  ;;  %v5893_v38 = vld [vmem:[%s8346_s6 + $0x1e4] ss:$8 sps:$4 sm:$0xff]   ;;  %v5891_v39 = vld [vmem:[%s8346_s6 + $0x1e0] ss:$8 sps:$4 sm:$0xff]  }
 0x16d   :  { %2114 = vmatpush1.bf16.msra.mxu1 %v5780_v40  ;;  %2594 = vmatpush1.bf16.msra.mxu0 %v5822_v41  ;;  %v5896_v40 = vld [vmem:[%s8346_s6 + $0x1f4] ss:$8 sps:$4 sm:$0xff]   ;;  %v5894_v41 = vld [vmem:[%s8346_s6 + $0x1f0] ss:$8 sps:$4 sm:$0xff]  }
 0x16e   :  { %2115 = vmatprep.subr.bf16.mxu1 %v5785_v42  ;;  %2595 = vmatprep.subr.bf16.mxu0 %v5827_v43  ;;  %v7457_v42 = vshrl.u32 %v40_v8, 7 }
 0x170   :  { %v7460_v43 = vsub.s32 0, %v7457_v42 }
 0x171   :  { %2116 = vmatpush1.bf16.msra.mxu1 %v5783_v44  ;;  %2596 = vmatpush1.bf16.msra.mxu0 %v5825_v45  ;;  %v7465_v44 = vld [vmem:[%s8345_s5] sm:$0xff]  ;;  %v7468_v45 = vsub.s32 1, %v7457_v42 }
 0x172   :  { %2117 = vmatprep.subr.bf16.mxu1 %v5788_v46  ;;  %2597 = vmatprep.subr.bf16.mxu0 %v5830_v47  ;;  %v118_v46 = vrot.slane %v7465_v44, %v7460_v43 }
 0x173   :  { %v122_v47 = vrot.slane %v7465_v44, %v7468_v45 }
 0x174   :  { %v510_v8 = vadd.f32 %v7214_v17, %v118_v46  ;;  %v129_v17 = vsub.s32 3, %v7457_v42  ;;  %v5947_v46 = vld [vmem:[%s8349_s9 + $0x4] ss:$28 sps:$4 sm:$0xff]  }
 0x175   :  { %2118 = vmatpush1.bf16.msra.mxu1 %v5786_v48  ;;  %2598 = vmatpush1.bf16.msra.mxu0 %v5828_v49  ;;  %v512_v48 = vadd.f32 %v7216_v18, %v122_v47  ;;  %v5950_v47 = vld [vmem:[%s8349_s9 + $0xc] ss:$28 sps:$4 sm:$0xff]  }
 0x176   :  { %2119 = vmatprep.subr.bf16.mxu1 %v5791_v50  ;;  %2599 = vmatprep.subr.bf16.mxu0 %v5833_v51 }
 0x179   :  { %2120 = vmatpush1.bf16.msra.mxu1 %v5789_v53  ;;  %2600 = vmatpush1.bf16.msra.mxu0 %v5831_v55 }
 0x17a   :  { %2121 = vmatprep.subr.bf16.mxu1 %v5794_v12  ;;  %2601 = vmatprep.subr.bf16.mxu0 %v5836_v58 }
 0x17d   :  { %2122 = vmatpush1.bf16.msra.mxu1 %v5792_v59  ;;  %2602 = vmatpush1.bf16.msra.mxu0 %v5834_v21 }
 0x17e   :  { %2123 = vmatprep.subr.bf16.mxu1 %v5797_v60  ;;  %2603 = vmatprep.subr.bf16.mxu0 %v5839_v20  ;;  %v125_v20 = vsub.s32 2, %v7457_v42 }
 0x180   :  { %v126_v18 = vrot.slane %v7465_v44, %v125_v20 }
 0x181   :  { %2124 = vmatpush1.bf16.msra.mxu1 %v5795_v62  ;;  %2604 = vmatpush1.bf16.msra.mxu0 %v5837_v63  ;;  %v130_v62 = vrot.slane %v7465_v44, %v129_v17 }
 0x182   :  { %2134 = vmatprep.subr.bf16.mxu1 %v5800_v0  ;;  %2605 = vmatprep.subr.bf16.mxu0 %v5842_v56 }
 0x184   :  { %2126 = vmatmul.mubr.bf16.vlgmr.msra.gmra.mrb[4].mxu1 %v7141_v54  ;;  %v5848_v54 = vld [vmem:[%s8346_s6 + $0xf4] ss:$8 sps:$4 sm:$0xff]  }
 0x185   :  { %2135 = vmatpush1.bf16.msra.mxu1 %v5798_v52  ;;  %2166 = vmatprep.mubr.bf16.mxu1 %v6319_v3 }
 0x186   :  { %2606 = vmatpush1.bf16.msra.mxu0 %v5840_v1 }
 0x187   :  { %2607 = vmatprep.subr.bf16.mxu0 %v5845_v19 }
 0x18a   :  { %2608 = vmatpush1.bf16.msra.mxu0 %v5843_v2 }
 0x18b   :  { %2609 = vmatprep.subr.bf16.mxu0 %v5848_v54 }
 0x18e   :  { %2610 = vmatpush1.bf16.msra.mxu0 %v5846_v61 }
 0x190   :  { %5060 = vmatmul.mubr.msk.bf16.vlgmr.msra.gmra.mrb[4].mxu1 %vm1843_vm2, %v7174_v4  ;;  %v5851_v4 = vld [vmem:[%s8346_s6 + $0x104] ss:$8 sps:$4 sm:$0xff]  }
 0x191   :  { %2620 = vmatprep.subr.bf16.mxu1 %v5851_v4 }
 0x192   :  { %2621 = vmatpush1.bf16.msra.mxu1 %v5849_v57  ;;  %v5897_v57 = vld [vmem:[%s8348_s8] ss:$16 sps:$4 sm:$0xff]  }
 0x193   :  { %2622 = vmatprep.subr.bf16.mxu1 %v5854_v5  ;;  %v5899_v5 = vld [vmem:[%s8348_s8 + $0x4] ss:$16 sps:$4 sm:$0xff]  }
 0x194   :  { %2860 = vmatprep.subr.bf16.mxu0 %v5899_v5  ;;  %v5956_v5 = vld [vmem:[%s8349_s9 + $0x44] ss:$28 sps:$4 sm:$0xff]  }
 0x196   :  { %2623 = vmatpush1.bf16.msra.mxu1 %v5852_v6  ;;  %v5900_v6 = vld [vmem:[%s8348_s8 + $0x8] ss:$16 sps:$4 sm:$0xff]  }
 0x197   :  { %2624 = vmatprep.subr.bf16.mxu1 %v5857_v7  ;;  %v5902_v7 = vld [vmem:[%s8348_s8 + $0xc] ss:$16 sps:$4 sm:$0xff]  }
 0x19a   :  { %2625 = vmatpush1.bf16.msra.mxu1 %v5855_v9  ;;  %v5908_v9 = vld [vmem:[%s8348_s8 + $0x2c] ss:$16 sps:$4 sm:$0xff]  }
 0x19b   :  { %2626 = vmatprep.subr.bf16.mxu1 %v5860_v10  ;;  %v5903_v10 = vld [vmem:[%s8348_s8 + $0x20] ss:$16 sps:$4 sm:$0xff]  }
 0x19e   :  { %2627 = vmatpush1.bf16.msra.mxu1 %v5858_v11  ;;  %v5906_v11 = vld [vmem:[%s8348_s8 + $0x28] ss:$16 sps:$4 sm:$0xff]  }
 0x19f   :  { %2628 = vmatprep.subr.bf16.mxu1 %v5863_v13  ;;  %v5911_v13 = vld [vmem:[%s8348_s8 + $0x44] ss:$16 sps:$4 sm:$0xff]  }
 0x1a2   :  { %2629 = vmatpush1.bf16.msra.mxu1 %v5861_v14  ;;  %v5914_v14 = vld [vmem:[%s8348_s8 + $0x4c] ss:$16 sps:$4 sm:$0xff]  }
 0x1a3   :  { %2630 = vmatprep.subr.bf16.mxu1 %v5866_v15  ;;  %v5909_v15 = vld [vmem:[%s8348_s8 + $0x40] ss:$16 sps:$4 sm:$0xff]  }
 0x1a6   :  { %2631 = vmatpush1.bf16.msra.mxu1 %v5864_v16  ;;  %v5912_v16 = vld [vmem:[%s8348_s8 + $0x48] ss:$16 sps:$4 sm:$0xff]  }
 0x1a7   :  { %2632 = vmatprep.subr.bf16.mxu1 %v5869_v22  ;;  %v5917_v22 = vld [vmem:[%s8348_s8 + $0x64] ss:$16 sps:$4 sm:$0xff]  }
 0x1aa   :  { %2633 = vmatpush1.bf16.msra.mxu1 %v5867_v23  ;;  %v5920_v23 = vld [vmem:[%s8348_s8 + $0x6c] ss:$16 sps:$4 sm:$0xff]  }
 0x1ab   :  { %2634 = vmatprep.subr.bf16.mxu1 %v5872_v24  ;;  %v5915_v24 = vld [vmem:[%s8348_s8 + $0x60] ss:$16 sps:$4 sm:$0xff]  }
 0x1ae   :  { %2635 = vmatpush1.bf16.msra.mxu1 %v5870_v25  ;;  %v5918_v25 = vld [vmem:[%s8348_s8 + $0x68] ss:$16 sps:$4 sm:$0xff]  }
 0x1af   :  { %2636 = vmatprep.subr.bf16.mxu1 %v5875_v26  ;;  %v5923_v26 = vld [vmem:[%s8348_s8 + $0x84] ss:$16 sps:$4 sm:$0xff]  }
 0x1b2   :  { %2637 = vmatpush1.bf16.msra.mxu1 %v5873_v27  ;;  %v5926_v27 = vld [vmem:[%s8348_s8 + $0x8c] ss:$16 sps:$4 sm:$0xff]  }
 0x1b3   :  { %2638 = vmatprep.subr.bf16.mxu1 %v5878_v28  ;;  %v5921_v28 = vld [vmem:[%s8348_s8 + $0x80] ss:$16 sps:$4 sm:$0xff]  }
 0x1b6   :  { %2639 = vmatpush1.bf16.msra.mxu1 %v5876_v29  ;;  %v5924_v29 = vld [vmem:[%s8348_s8 + $0x88] ss:$16 sps:$4 sm:$0xff]  }
 0x1b7   :  { %2640 = vmatprep.subr.bf16.mxu1 %v5881_v30  ;;  %v5929_v30 = vld [vmem:[%s8348_s8 + $0xa4] ss:$16 sps:$4 sm:$0xff]  }
 0x1ba   :  { %2641 = vmatpush1.bf16.msra.mxu1 %v5879_v31  ;;  %v5932_v31 = vld [vmem:[%s8348_s8 + $0xac] ss:$16 sps:$4 sm:$0xff]  }
 0x1bb   :  { %2642 = vmatprep.subr.bf16.mxu1 %v5884_v32  ;;  %v5927_v32 = vld [vmem:[%s8348_s8 + $0xa0] ss:$16 sps:$4 sm:$0xff]  }
 0x1be   :  { %2643 = vmatpush1.bf16.msra.mxu1 %v5882_v33  ;;  %v5930_v33 = vld [vmem:[%s8348_s8 + $0xa8] ss:$16 sps:$4 sm:$0xff]  }
 0x1bf   :  { %2644 = vmatprep.subr.bf16.mxu1 %v5887_v34  ;;  %v5935_v34 = vld [vmem:[%s8348_s8 + $0xc4] ss:$16 sps:$4 sm:$0xff]  }
 0x1c2   :  { %2645 = vmatpush1.bf16.msra.mxu1 %v5885_v35  ;;  %v5938_v35 = vld [vmem:[%s8348_s8 + $0xcc] ss:$16 sps:$4 sm:$0xff]  }
 0x1c3   :  { %2646 = vmatprep.subr.bf16.mxu1 %v5890_v36  ;;  %v5933_v36 = vld [vmem:[%s8348_s8 + $0xc0] ss:$16 sps:$4 sm:$0xff]  }
 0x1c6   :  { %2647 = vmatpush1.bf16.msra.mxu1 %v5888_v37  ;;  %v5936_v37 = vld [vmem:[%s8348_s8 + $0xc8] ss:$16 sps:$4 sm:$0xff]  }
 0x1c7   :  { %2648 = vmatprep.subr.bf16.mxu1 %v5893_v38  ;;  %v5941_v38 = vld [vmem:[%s8348_s8 + $0xe4] ss:$16 sps:$4 sm:$0xff]  }
 0x1ca   :  { %2649 = vmatpush1.bf16.msra.mxu1 %v5891_v39  ;;  %v5944_v39 = vld [vmem:[%s8348_s8 + $0xec] ss:$16 sps:$4 sm:$0xff]  }
 0x1cb   :  { %2650 = vmatprep.subr.bf16.mxu1 %v5896_v40  ;;  %v5939_v40 = vld [vmem:[%s8348_s8 + $0xe0] ss:$16 sps:$4 sm:$0xff]  }
 0x1ce   :  { %2651 = vmatpush1.bf16.msra.mxu1 %v5894_v41  ;;  %v5942_v41 = vld [vmem:[%s8348_s8 + $0xe8] ss:$16 sps:$4 sm:$0xff]  }
 0x1cf   :  { %2901 = vmatprep.subr.bf16.mxu1 %v5902_v7  ;;  %v5954_v7 = vld [vmem:[%s8349_s9 + $0x40] ss:$28 sps:$4 sm:$0xff]  }
 0x223   :  { %v2004_v49 = vpop.f32.mrb[4].mxu0 }
 0x224   :  { %v5433_v50 = vadd.f32 %v2004_v49, %v510_v8  ;;  %v2006_v51 = vpop.f32.mrb[5].mxu0 }
 0x225   :  { %v5435_v53 = vadd.f32 %v2006_v51, %v512_v48  ;;  %v2008_v55 = vpop.f32.mrb[6].mxu0  ;;  %v2247_v51 = vld [vmem:[%s8347_s7] sm:$0x3] }
 0x226   :  { %v2175_v12 = vmax.f32 %v5433_v50, 0.0  ;;  %v2009_v58 = vpop.f32.mrb[7].mxu0  ;;  %v2256_v55 = vrot.slane %v2247_v51, %v7468_v45 }
 0x227   :  { %v2176_v59 = vmax.f32 %v5435_v53, 0.0  ;;  %v2252_v53 = vrot.slane %v2247_v51, %v7460_v43  ;;  %v6005_v51 = vld [vmem:[%s8349_s9 + $0x230] ss:$28 sps:$4 sm:$0xff]  }
 0x228   :  { %v2179_v60 = vpack.c.bf16 %v2175_v12, %v2175_v12 }
 0x229   :  { %v2180_v21 = vpack.c.bf16 %v2176_v59, %v2176_v59 }
 0x22b   :  { %2611 = vmatprep.mubr.bf16.mxu0 %v2180_v21 }
 0x22c   :  { %2612 = vmatmul.mubr.bf16.vlgmr.msra.gmra.mrb[8].mxu0 %v2179_v60 }
 0x22d   :  { %2892 = vmatprep.mubr.bf16.mxu0 %v6319_v3  ;;  %2861 = vmatpush1.bf16.msra.mxu0 %v5897_v57  ;;  %v5953_v57 = vld [vmem:[%s8349_s9 + $0x3c] ss:$28 sps:$4 sm:$0xff]  }
 0x263   :  { %v2168_v63 = vpop.f32.mrb[4].mxu1 }
 0x264   :  { %v5436_v0 = vadd.f32 %v2168_v63, %v126_v18  ;;  %v2170_v56 = vpop.f32.mrb[5].mxu1 }
 0x265   :  { %v5437_v52 = vadd.f32 %v2170_v56, %v130_v62  ;;  %v2172_v1 = vpop.f32.mrb[6].mxu1 }
 0x266   :  { %v2177_v19 = vmax.f32 %v5436_v0, 0.0  ;;  %v2173_v2 = vpop.f32.mrb[7].mxu1 }
 0x267   :  { %v2178_v54 = vmax.f32 %v5437_v52, 0.0  ;;  %v2661_v52 = vld [vmem:[%s8342_s2] sm:$0xff] }
 0x268   :  { %v2181_v4 = vpack.c.bf16 %v2177_v19, %v2177_v19 }
 0x269   :  { %v2182_v61 = vpack.c.bf16 %v2178_v54, %v2178_v54  ;;  %v5945_v54 = vld [vmem:[%s8349_s9] ss:$28 sps:$4 sm:$0xff]  }
 0x26b   :  { %2652 = vmatprep.mubr.bf16.mxu1 %v2182_v61  ;;  %v5948_v61 = vld [vmem:[%s8349_s9 + $0x8] ss:$28 sps:$4 sm:$0xff]  }
 0x26c   :  { %2653 = vmatmul.mubr.bf16.vlgmr.msra.gmra.mrb[12].mxu1 %v2181_v4 }
 0x26d   :  { %2933 = vmatprep.mubr.bf16.mxu1 %v6319_v3  ;;  %v5905_v3 = vld [vmem:[%s8348_s8 + $0x24] ss:$16 sps:$4 sm:$0xff]   ;;  %2902 = vmatpush1.bf16.msra.mxu1 %v5900_v6 }
 0x26e   :  { %2862 = vmatprep.subr.bf16.mxu0 %v5905_v3  ;;  %2903 = vmatprep.subr.bf16.mxu1 %v5908_v9  ;;  %v5951_v6 = vld [vmem:[%s8349_s9 + $0x38] ss:$28 sps:$4 sm:$0xff]  }
 0x26f   :  { %2863 = vmatpush1.bf16.msra.mxu0 %v5903_v10  ;;  %v5959_v3 = vld [vmem:[%s8349_s9 + $0x74] ss:$28 sps:$4 sm:$0xff]   ;;  %v5962_v9 = vld [vmem:[%s8349_s9 + $0x7c] ss:$28 sps:$4 sm:$0xff]  }
 0x270   :  { %2864 = vmatprep.subr.bf16.mxu0 %v5911_v13  ;;  %v5957_v10 = vld [vmem:[%s8349_s9 + $0x70] ss:$28 sps:$4 sm:$0xff]  }
 0x271   :  { %2904 = vmatpush1.bf16.msra.mxu1 %v5906_v11  ;;  %v5960_v11 = vld [vmem:[%s8349_s9 + $0x78] ss:$28 sps:$4 sm:$0xff]   ;;  %v5965_v13 = vld [vmem:[%s8349_s9 + $0xac] ss:$28 sps:$4 sm:$0xff]  }
 0x272   :  { %2905 = vmatprep.subr.bf16.mxu1 %v5914_v14  ;;  %v5968_v14 = vld [vmem:[%s8349_s9 + $0xb4] ss:$28 sps:$4 sm:$0xff]  }
 0x273   :  { %2865 = vmatpush1.bf16.msra.mxu0 %v5909_v15  ;;  %v5963_v15 = vld [vmem:[%s8349_s9 + $0xa8] ss:$28 sps:$4 sm:$0xff]  }
 0x274   :  { %2866 = vmatprep.subr.bf16.mxu0 %v5917_v22  ;;  %v5971_v22 = vld [vmem:[%s8349_s9 + $0xe4] ss:$28 sps:$4 sm:$0xff]  }
 0x275   :  { %2906 = vmatpush1.bf16.msra.mxu1 %v5912_v16  ;;  %v5966_v16 = vld [vmem:[%s8349_s9 + $0xb0] ss:$28 sps:$4 sm:$0xff]  }
 0x276   :  { %2907 = vmatprep.subr.bf16.mxu1 %v5920_v23  ;;  %v5974_v23 = vld [vmem:[%s8349_s9 + $0xec] ss:$28 sps:$4 sm:$0xff]  }
 0x277   :  { %2867 = vmatpush1.bf16.msra.mxu0 %v5915_v24  ;;  %v5969_v24 = vld [vmem:[%s8349_s9 + $0xe0] ss:$28 sps:$4 sm:$0xff]  }
 0x278   :  { %2868 = vmatprep.subr.bf16.mxu0 %v5923_v26  ;;  %v5977_v26 = vld [vmem:[%s8349_s9 + $0x11c] ss:$28 sps:$4 sm:$0xff]  }
 0x279   :  { %2908 = vmatpush1.bf16.msra.mxu1 %v5918_v25  ;;  %v5972_v25 = vld [vmem:[%s8349_s9 + $0xe8] ss:$28 sps:$4 sm:$0xff]  }
 0x27a   :  { %2909 = vmatprep.subr.bf16.mxu1 %v5926_v27  ;;  %v5980_v27 = vld [vmem:[%s8349_s9 + $0x124] ss:$28 sps:$4 sm:$0xff]  }
 0x27b   :  { %2869 = vmatpush1.bf16.msra.mxu0 %v5921_v28  ;;  %v5975_v28 = vld [vmem:[%s8349_s9 + $0x118] ss:$28 sps:$4 sm:$0xff]  }
 0x27c   :  { %2870 = vmatprep.subr.bf16.mxu0 %v5929_v30  ;;  %v5983_v30 = vld [vmem:[%s8349_s9 + $0x154] ss:$28 sps:$4 sm:$0xff]  }
 0x27d   :  { %2910 = vmatpush1.bf16.msra.mxu1 %v5924_v29  ;;  %v5978_v29 = vld [vmem:[%s8349_s9 + $0x120] ss:$28 sps:$4 sm:$0xff]  }
 0x27e   :  { %2911 = vmatprep.subr.bf16.mxu1 %v5932_v31  ;;  %v5986_v31 = vld [vmem:[%s8349_s9 + $0x15c] ss:$28 sps:$4 sm:$0xff]  }
 0x27f   :  { %2871 = vmatpush1.bf16.msra.mxu0 %v5927_v32  ;;  %v5981_v32 = vld [vmem:[%s8349_s9 + $0x150] ss:$28 sps:$4 sm:$0xff]  }
 0x280   :  { %2872 = vmatprep.subr.bf16.mxu0 %v5935_v34  ;;  %v5989_v34 = vld [vmem:[%s8349_s9 + $0x18c] ss:$28 sps:$4 sm:$0xff]  }
 0x281   :  { %2912 = vmatpush1.bf16.msra.mxu1 %v5930_v33  ;;  %v5984_v33 = vld [vmem:[%s8349_s9 + $0x158] ss:$28 sps:$4 sm:$0xff]  }
 0x282   :  { %2913 = vmatprep.subr.bf16.mxu1 %v5938_v35  ;;  %v5992_v35 = vld [vmem:[%s8349_s9 + $0x194] ss:$28 sps:$4 sm:$0xff]  }
 0x283   :  { %2873 = vmatpush1.bf16.msra.mxu0 %v5933_v36  ;;  %v5987_v36 = vld [vmem:[%s8349_s9 + $0x188] ss:$28 sps:$4 sm:$0xff]  }
 0x284   :  { %2874 = vmatprep.subr.bf16.mxu0 %v5941_v38  ;;  %v5995_v38 = vld [vmem:[%s8349_s9 + $0x1c4] ss:$28 sps:$4 sm:$0xff]  }
 0x285   :  { %2914 = vmatpush1.bf16.msra.mxu1 %v5936_v37  ;;  %v5990_v37 = vld [vmem:[%s8349_s9 + $0x190] ss:$28 sps:$4 sm:$0xff]  }
 0x286   :  { %2915 = vmatprep.subr.bf16.mxu1 %v5944_v39  ;;  %v5998_v39 = vld [vmem:[%s8349_s9 + $0x1cc] ss:$28 sps:$4 sm:$0xff]  }
 0x287   :  { %2875 = vmatpush1.bf16.msra.mxu0 %v5939_v40  ;;  %v5993_v40 = vld [vmem:[%s8349_s9 + $0x1c0] ss:$28 sps:$4 sm:$0xff]  }
 0x288   :  { %4395 = vmatprep.subr.bf16.mxu0 %v5947_v46  ;;  %v6001_v46 = vld [vmem:[%s8349_s9 + $0x1fc] ss:$28 sps:$4 sm:$0xff]  }
 0x289   :  { %2916 = vmatpush1.bf16.msra.mxu1 %v5942_v41  ;;  %v5996_v41 = vld [vmem:[%s8349_s9 + $0x1c8] ss:$28 sps:$4 sm:$0xff]  }
 0x28a   :  { %4477 = vmatprep.subr.bf16.mxu1 %v5950_v47  ;;  %v6004_v47 = vld [vmem:[%s8349_s9 + $0x204] ss:$28 sps:$4 sm:$0xff]  }
 0x2ff   :  { %v2613_v8 = vpop.f32.mrb[8].mxu0 }
 0x300   :  { %v2615_v48 = vpop.f32.mrb[9].mxu0  ;;  %v2614_v12 = vadd.f32 %v2613_v8, %v2252_v53  ;;  %v5999_v8 = vld [vmem:[%s8349_s9 + $0x1f8] ss:$28 sps:$4 sm:$0xff]  }
 0x301   :  { %v2617_v49 = vpop.f32.mrb[10].mxu0  ;;  %v2616_v58 = vadd.f32 %v2615_v48, %v2256_v55  ;;  %v6002_v48 = vld [vmem:[%s8349_s9 + $0x200] ss:$28 sps:$4 sm:$0xff]   ;;  %v6008_v53 = vld [vmem:[%s8349_s9 + $0x238] ss:$28 sps:$4 sm:$0xff]  }
 0x302   :  { %v2618_v50 = vpop.f32.mrb[11].mxu0  ;;  %v6007_v49 = vld [vmem:[%s8349_s9 + $0x234] ss:$28 sps:$4 sm:$0xff]   ;;  %v6013_v55 = vld [vmem:[%s8349_s9 + $0x26c] ss:$28 sps:$4 sm:$0xff]  }
 0x303   :  { %v6010_v50 = vld [vmem:[%s8349_s9 + $0x23c] ss:$28 sps:$4 sm:$0xff]  }
 0x33f   :  { %v2654_v59 = vpop.f32.mrb[12].mxu1 }
 0x340   :  { %v2655_v21 = vadd.f32 %v2654_v59, %v2614_v12  ;;  %v2656_v60 = vpop.f32.mrb[13].mxu1  ;;  %v6016_v12 = vld [vmem:[%s8349_s9 + $0x274] ss:$28 sps:$4 sm:$0xff]  }
 0x341   :  { %v2657_v18 = vadd.f32 %v2656_v60, %v2616_v58  ;;  %v2658_v62 = vpop.f32.mrb[14].mxu1  ;;  %v6011_v58 = vld [vmem:[%s8349_s9 + $0x268] ss:$28 sps:$4 sm:$0xff]   ;;  %v6014_v59 = vld [vmem:[%s8349_s9 + $0x270] ss:$28 sps:$4 sm:$0xff]  }
 0x342   :  { %v2659_v63 = vpop.f32.mrb[15].mxu1  ;;  %v6022_v60 = vld [vmem:[%s8349_s9 + $0x2ac] ss:$28 sps:$4 sm:$0xff]  }
 0x343   :  { %v2662_v0 = vmul.f32 0.5, %v2657_v18  ;;  %v6017_v18 = vld [vmem:[%s8349_s9 + $0x2a0] ss:$28 sps:$4 sm:$0xff]   ;;  %v6020_v62 = vld [vmem:[%s8349_s9 + $0x2a8] ss:$28 sps:$4 sm:$0xff]  }
 0x344   :  { %v6025_v63 = vld [vmem:[%s8349_s9 + $0x2dc] ss:$28 sps:$4 sm:$0xff]  }
 0x345   :  { %v2663_v56 = vmul.f32 1.442695, %v2662_v0  ;;  %v6028_v0 = vld [vmem:[%s8349_s9 + $0x2e4] ss:$28 sps:$4 sm:$0xff]  }
 0x347   :  { %6265 = vpow2.f32 %v2663_v56  ;;  %v6023_v56 = vld [vmem:[%s8349_s9 + $0x2d8] ss:$28 sps:$4 sm:$0xff]  }
 0x351   :  { %v6266_v1 = vpop.eup %6265 }
 0x352   :  { %v2665_v19 = vmul.f32 %v6266_v1, %v2661_v52  ;;  %v6026_v52 = vld [vmem:[%s8349_s9 + $0x2e0] ss:$28 sps:$4 sm:$0xff]   ;;  %v6031_v1 = vld [vmem:[%s8349_s9 + $0x314] ss:$28 sps:$4 sm:$0xff]  }
 0x354   :  { %v2666_v2 = vadd.f32 %v2665_v19, %v2655_v21  ;;  %v6019_v21 = vld [vmem:[%s8349_s9 + $0x2a4] ss:$28 sps:$4 sm:$0xff]   ;;  %v6034_v19 = vld [vmem:[%s8349_s9 + $0x31c] ss:$28 sps:$4 sm:$0xff]  }
 0x356   :  { %v2667_v4 = vpack.c.bf16 %v2666_v2, %v2666_v2  ;;  %v6029_v2 = vld [vmem:[%s8349_s9 + $0x310] ss:$28 sps:$4 sm:$0xff]  }
 0x358   :  { %2893 = vmatmul.mubr.bf16.vlgmr.msra.gmra.mrb[0].mxu0 %v2667_v4  ;;  %2934 = vmatmul.mubr.bf16.vlgmr.msra.gmra.mrb[8].mxu1 %v2667_v4  ;;  %v6040_v4 = vld [vmem:[%s8349_s9 + $0x354] ss:$28 sps:$4 sm:$0xff]  }
 0x359   :  { %4396 = vmatpush1.bf16.msra.mxu0 %v5945_v54  ;;  %4478 = vmatpush1.bf16.msra.mxu1 %v5948_v61  ;;  %v6032_v54 = vld [vmem:[%s8349_s9 + $0x318] ss:$28 sps:$4 sm:$0xff]   ;;  %v6037_v61 = vld [vmem:[%s8349_s9 + $0x34c] ss:$28 sps:$4 sm:$0xff]  }
 0x35a   :  { %4397 = vmatprep.subr.bf16.mxu0 %v5953_v57  ;;  %4479 = vmatprep.subr.bf16.mxu1 %v5956_v5  ;;  %v6035_v57 = vld [vmem:[%s8349_s9 + $0x348] ss:$28 sps:$4 sm:$0xff]   ;;  %v6038_v5 = vld [vmem:[%s8349_s9 + $0x350] ss:$28 sps:$4 sm:$0xff]  }
 0x35d   :  { %4398 = vmatpush1.bf16.msra.mxu0 %v5951_v6  ;;  %4480 = vmatpush1.bf16.msra.mxu1 %v5954_v7  ;;  %v6043_v6 = vld [vmem:[%s8349_s9 + $0x384] ss:$28 sps:$4 sm:$0xff]   ;;  %v6046_v7 = vld [vmem:[%s8349_s9 + $0x38c] ss:$28 sps:$4 sm:$0xff]  }
 0x35e   :  { %4399 = vmatprep.subr.bf16.mxu0 %v5959_v3  ;;  %4481 = vmatprep.subr.bf16.mxu1 %v5962_v9  ;;  %v133_v3 = vsub.s32 4, %v7457_v42  ;;  %v137_v9 = vsub.s32 5, %v7457_v42 }
 0x361   :  { %4400 = vmatpush1.bf16.msra.mxu0 %v5957_v10  ;;  %4482 = vmatpush1.bf16.msra.mxu1 %v5960_v11  ;;  %v145_v10 = vsub.s32 7, %v7457_v42  ;;  %v134_v11 = vrot.slane %v7465_v44, %v133_v3 }
 0x362   :  { %4401 = vmatprep.subr.bf16.mxu0 %v5965_v13  ;;  %4483 = vmatprep.subr.bf16.mxu1 %v5968_v14  ;;  %v138_v13 = vrot.slane %v7465_v44, %v137_v9 }
 0x363   :  { %v146_v14 = vrot.slane %v7465_v44, %v145_v10  ;;  %v6100_v10 = vld [vmem:[%s8349_s9 + $0x584] ss:$28 sps:$4 sm:$0xff]  }
 0x365   :  { %4402 = vmatpush1.bf16.msra.mxu0 %v5963_v15  ;;  %4484 = vmatpush1.bf16.msra.mxu1 %v5966_v16 }
 0x366   :  { %4403 = vmatprep.subr.bf16.mxu0 %v5971_v22  ;;  %4485 = vmatprep.subr.bf16.mxu1 %v5974_v23 }
 0x369   :  { %4404 = vmatpush1.bf16.msra.mxu0 %v5969_v24  ;;  %4486 = vmatpush1.bf16.msra.mxu1 %v5972_v25 }
 0x36a   :  { %4405 = vmatprep.subr.bf16.mxu0 %v5977_v26  ;;  %4487 = vmatprep.subr.bf16.mxu1 %v5980_v27 }
 0x36d   :  { %4406 = vmatpush1.bf16.msra.mxu0 %v5975_v28  ;;  %4488 = vmatpush1.bf16.msra.mxu1 %v5978_v29 }
 0x36e   :  { %4407 = vmatprep.subr.bf16.mxu0 %v5983_v30  ;;  %4489 = vmatprep.subr.bf16.mxu1 %v5986_v31 }
 0x371   :  { %4408 = vmatpush1.bf16.msra.mxu0 %v5981_v32  ;;  %4490 = vmatpush1.bf16.msra.mxu1 %v5984_v33 }
 0x372   :  { %4409 = vmatprep.subr.bf16.mxu0 %v5989_v34  ;;  %4491 = vmatprep.subr.bf16.mxu1 %v5992_v35  ;;  %v6041_v35 = vld [vmem:[%s8349_s9 + $0x380] ss:$28 sps:$4 sm:$0xff]  }
 0x375   :  { %4410 = vmatpush1.bf16.msra.mxu0 %v5987_v36  ;;  %4492 = vmatpush1.bf16.msra.mxu1 %v5990_v37  ;;  %v6044_v36 = vld [vmem:[%s8349_s9 + $0x388] ss:$28 sps:$4 sm:$0xff]  }
 0x376   :  { %4411 = vmatprep.subr.bf16.mxu0 %v5995_v38  ;;  %4493 = vmatprep.subr.bf16.mxu1 %v5998_v39  ;;  %v6049_v38 = vld [vmem:[%s8349_s9 + $0x3bc] ss:$28 sps:$4 sm:$0xff]   ;;  %v6052_v39 = vld [vmem:[%s8349_s9 + $0x3c4] ss:$28 sps:$4 sm:$0xff]  }
 0x379   :  { %4412 = vmatpush1.bf16.msra.mxu0 %v5993_v40  ;;  %4494 = vmatpush1.bf16.msra.mxu1 %v5996_v41  ;;  %v6047_v41 = vld [vmem:[%s8349_s9 + $0x3b8] ss:$28 sps:$4 sm:$0xff]  }
 0x37a   :  { %4413 = vmatprep.subr.bf16.mxu0 %v6001_v46  ;;  %4495 = vmatprep.subr.bf16.mxu1 %v6004_v47  ;;  %v6050_v46 = vld [vmem:[%s8349_s9 + $0x3c0] ss:$28 sps:$4 sm:$0xff]   ;;  %v6055_v47 = vld [vmem:[%s8349_s9 + $0x3f4] ss:$28 sps:$4 sm:$0xff]  }
 0x37d   :  { %4414 = vmatpush1.bf16.msra.mxu0 %v5999_v8  ;;  %4496 = vmatpush1.bf16.msra.mxu1 %v6002_v48  ;;  %v6058_v8 = vld [vmem:[%s8349_s9 + $0x3fc] ss:$28 sps:$4 sm:$0xff]   ;;  %v6053_v48 = vld [vmem:[%s8349_s9 + $0x3f0] ss:$28 sps:$4 sm:$0xff]  }
 0x37e   :  { %4415 = vmatprep.subr.bf16.mxu0 %v6007_v49  ;;  %4497 = vmatprep.subr.bf16.mxu1 %v6010_v50  ;;  %v6056_v49 = vld [vmem:[%s8349_s9 + $0x3f8] ss:$28 sps:$4 sm:$0xff]   ;;  %v6061_v50 = vld [vmem:[%s8349_s9 + $0x42c] ss:$28 sps:$4 sm:$0xff]  }
 0x381   :  { %4416 = vmatpush1.bf16.msra.mxu0 %v6005_v51  ;;  %4498 = vmatpush1.bf16.msra.mxu1 %v6008_v53  ;;  %v6064_v51 = vld [vmem:[%s8349_s9 + $0x434] ss:$28 sps:$4 sm:$0xff]   ;;  %v6059_v53 = vld [vmem:[%s8349_s9 + $0x428] ss:$28 sps:$4 sm:$0xff]  }
 0x382   :  { %4417 = vmatprep.subr.bf16.mxu0 %v6013_v55  ;;  %4499 = vmatprep.subr.bf16.mxu1 %v6016_v12  ;;  %v6062_v55 = vld [vmem:[%s8349_s9 + $0x430] ss:$28 sps:$4 sm:$0xff]   ;;  %v6067_v12 = vld [vmem:[%s8349_s9 + $0x464] ss:$28 sps:$4 sm:$0xff]  }
 0x385   :  { %4418 = vmatpush1.bf16.msra.mxu0 %v6011_v58  ;;  %4500 = vmatpush1.bf16.msra.mxu1 %v6014_v59  ;;  %v6070_v58 = vld [vmem:[%s8349_s9 + $0x46c] ss:$28 sps:$4 sm:$0xff]   ;;  %v6065_v59 = vld [vmem:[%s8349_s9 + $0x460] ss:$28 sps:$4 sm:$0xff]  }
 0x386   :  { %4419 = vmatprep.subr.bf16.mxu0 %v6019_v21  ;;  %4501 = vmatprep.subr.bf16.mxu1 %v6022_v60  ;;  %v6068_v21 = vld [vmem:[%s8349_s9 + $0x468] ss:$28 sps:$4 sm:$0xff]   ;;  %v6073_v60 = vld [vmem:[%s8349_s9 + $0x49c] ss:$28 sps:$4 sm:$0xff]  }
 0x389   :  { %4420 = vmatpush1.bf16.msra.mxu0 %v6017_v18  ;;  %4502 = vmatpush1.bf16.msra.mxu1 %v6020_v62  ;;  %v6076_v18 = vld [vmem:[%s8349_s9 + $0x4a4] ss:$28 sps:$4 sm:$0xff]   ;;  %v6071_v62 = vld [vmem:[%s8349_s9 + $0x498] ss:$28 sps:$4 sm:$0xff]  }
 0x38a   :  { %4421 = vmatprep.subr.bf16.mxu0 %v6025_v63  ;;  %4503 = vmatprep.subr.bf16.mxu1 %v6028_v0  ;;  %v6074_v63 = vld [vmem:[%s8349_s9 + $0x4a0] ss:$28 sps:$4 sm:$0xff]   ;;  %v6079_v0 = vld [vmem:[%s8349_s9 + $0x4d4] ss:$28 sps:$4 sm:$0xff]  }
 0x38d   :  { %4422 = vmatpush1.bf16.msra.mxu0 %v6023_v56  ;;  %4504 = vmatpush1.bf16.msra.mxu1 %v6026_v52  ;;  %v6082_v56 = vld [vmem:[%s8349_s9 + $0x4dc] ss:$28 sps:$4 sm:$0xff]   ;;  %v6077_v52 = vld [vmem:[%s8349_s9 + $0x4d0] ss:$28 sps:$4 sm:$0xff]  }
 0x38e   :  { %4423 = vmatprep.subr.bf16.mxu0 %v6031_v1  ;;  %4505 = vmatprep.subr.bf16.mxu1 %v6034_v19  ;;  %v6080_v1 = vld [vmem:[%s8349_s9 + $0x4d8] ss:$28 sps:$4 sm:$0xff]   ;;  %v6085_v19 = vld [vmem:[%s8349_s9 + $0x50c] ss:$28 sps:$4 sm:$0xff]  }
 0x391   :  { %4424 = vmatpush1.bf16.msra.mxu0 %v6029_v2  ;;  %4506 = vmatpush1.bf16.msra.mxu1 %v6032_v54  ;;  %v6088_v2 = vld [vmem:[%s8349_s9 + $0x514] ss:$28 sps:$4 sm:$0xff]   ;;  %v6083_v54 = vld [vmem:[%s8349_s9 + $0x508] ss:$28 sps:$4 sm:$0xff]  }
 0x392   :  { %4425 = vmatprep.subr.bf16.mxu0 %v6037_v61  ;;  %4507 = vmatprep.subr.bf16.mxu1 %v6040_v4  ;;  %v6086_v61 = vld [vmem:[%s8349_s9 + $0x510] ss:$28 sps:$4 sm:$0xff]   ;;  %v6091_v4 = vld [vmem:[%s8349_s9 + $0x544] ss:$28 sps:$4 sm:$0xff]  }
 0x395   :  { %4426 = vmatpush1.bf16.msra.mxu0 %v6035_v57  ;;  %4508 = vmatpush1.bf16.msra.mxu1 %v6038_v5  ;;  %v6094_v57 = vld [vmem:[%s8349_s9 + $0x54c] ss:$28 sps:$4 sm:$0xff]   ;;  %v6089_v5 = vld [vmem:[%s8349_s9 + $0x540] ss:$28 sps:$4 sm:$0xff]  }
 0x396   :  { %4436 = vmatprep.subr.bf16.mxu0 %v6043_v6  ;;  %4518 = vmatprep.subr.bf16.mxu1 %v6046_v7  ;;  %v6092_v6 = vld [vmem:[%s8349_s9 + $0x548] ss:$28 sps:$4 sm:$0xff]   ;;  %v6097_v7 = vld [vmem:[%s8349_s9 + $0x57c] ss:$28 sps:$4 sm:$0xff]  }
 0x42b   :  { %v2894_v15 = vpop.f32.mrb[0].mxu0  ;;  %v7798_v16 = vpop.f32.mrb[8].mxu1 }
 0x42c   :  { %v5438_v22 = vadd.f32 %v2894_v15, %v134_v11  ;;  %v2896_v23 = vpop.f32.mrb[1].mxu0  ;;  %v2937_v24 = vpop.f32.mrb[9].mxu1  ;;  %v6095_v11 = vld [vmem:[%s8349_s9 + $0x578] ss:$28 sps:$4 sm:$0xff]  }
 0x42d   :  { %v5439_v25 = vadd.f32 %v2896_v23, %v138_v13  ;;  %v5441_v26 = vadd.f32 %v2937_v24, %v146_v14  ;;  %v2898_v27 = vpop.f32.mrb[2].mxu0  ;;  %v2939_v28 = vpop.f32.mrb[10].mxu1  ;;  %v6098_v13 = vld [vmem:[%s8349_s9 + $0x580] ss:$28 sps:$4 sm:$0xff]   ;;  %v6103_v14 = vld [vmem:[%s8349_s9 + $0x5b4] ss:$28 sps:$4 sm:$0xff]  }
 0x42e   :  { %v2942_v29 = vmax.f32 %v5438_v22, 0.0  ;;  %v2899_v30 = vpop.f32.mrb[3].mxu0  ;;  %v2940_v31 = vpop.f32.mrb[11].mxu1  ;;  %v6106_v15 = vld [vmem:[%s8349_s9 + $0x5bc] ss:$28 sps:$4 sm:$0xff]  }
 0x42f   :  { %v2943_v32 = vmax.f32 %v5439_v25, 0.0  ;;  %v2945_v33 = vmax.f32 %v5441_v26, 0.0  ;;  %v6101_v22 = vld [vmem:[%s8349_s9 + $0x5b0] ss:$28 sps:$4 sm:$0xff]   ;;  %v6104_v23 = vld [vmem:[%s8349_s9 + $0x5b8] ss:$28 sps:$4 sm:$0xff]  }
 0x430   :  { %v7808_v37 = vpack.c.bf16 %v2942_v29, %v2942_v29  ;;  %v6109_v24 = vld [vmem:[%s8349_s9 + $0x5ec] ss:$28 sps:$4 sm:$0xff]   ;;  %v6112_v25 = vld [vmem:[%s8349_s9 + $0x5f4] ss:$28 sps:$4 sm:$0xff]   ;;  %v6115_v28 = vld [vmem:[%s8349_s9 + $0x624] ss:$28 sps:$4 sm:$0xff]  }
 0x431   :  { %v7800_v34 = vpack.c.bf16 %v2943_v32, %v2943_v32  ;;  %v7818_v40 = vpack.c.bf16 %v2945_v33, %v2945_v33  ;;  %v6107_v26 = vld [vmem:[%s8349_s9 + $0x5e8] ss:$28 sps:$4 sm:$0xff]   ;;  %v6110_v27 = vld [vmem:[%s8349_s9 + $0x5f0] ss:$28 sps:$4 sm:$0xff]   ;;  %v6113_v30 = vld [vmem:[%s8349_s9 + $0x620] ss:$28 sps:$4 sm:$0xff]  }
 0x432   :  { %v6118_v29 = vld [vmem:[%s8349_s9 + $0x62c] ss:$28 sps:$4 sm:$0xff]   ;;  %v141_v32 = vsub.s32 6, %v7457_v42  ;;  %v6121_v33 = vld [vmem:[%s8349_s9 + $0x65c] ss:$28 sps:$4 sm:$0xff]  }
 0x433   :  { %4427 = vmatprep.mubr.bf16.mxu0 %v7800_v34  ;;  %4509 = vmatprep.mubr.bf16.mxu1 %v7800_v34  ;;  %v6116_v31 = vld [vmem:[%s8349_s9 + $0x628] ss:$28 sps:$4 sm:$0xff]  }
 0x434   :  { %4428 = vmatmul.mubr.bf16.vlgmr.msra.gmra.mrb[12].mxu0 %v7808_v37  ;;  %4510 = vmatmul.mubr.bf16.vlgmr.msra.gmra.mrb[16].mxu1 %v7808_v37 }
 0x435   :  { %4437 = vmatpush1.bf16.msra.mxu0 %v6041_v35  ;;  %4519 = vmatpush1.bf16.msra.mxu1 %v6044_v36  ;;  %v6124_v35 = vld [vmem:[%s8349_s9 + $0x664] ss:$28 sps:$4 sm:$0xff]   ;;  %v6119_v36 = vld [vmem:[%s8349_s9 + $0x658] ss:$28 sps:$4 sm:$0xff]  }
 0x436   :  { %4468 = vmatprep.mubr.bf16.mxu0 %v7818_v40  ;;  %4550 = vmatprep.mubr.bf16.mxu1 %v7818_v40 }
 0x437   :  { %4438 = vmatprep.subr.bf16.mxu0 %v6049_v38  ;;  %4520 = vmatprep.subr.bf16.mxu1 %v6052_v39  ;;  %v6122_v38 = vld [vmem:[%s8349_s9 + $0x660] ss:$28 sps:$4 sm:$0xff]   ;;  %v142_v39 = vrot.slane %v7465_v44, %v141_v32  ;;  %v6128_v44 = vld [vmem:[%s8349_s9 + $0x698] ss:$28 sps:$4 sm:$0xff]  }
 0x439   :  { %4439 = vmatpush1.bf16.msra.mxu0 %v6047_v41  ;;  %4521 = vmatpush1.bf16.msra.mxu1 %v6050_v46  ;;  %v6127_v41 = vld [vmem:[%s8349_s9 + $0x694] ss:$28 sps:$4 sm:$0xff]   ;;  %v6130_v46 = vld [vmem:[%s8349_s9 + $0x69c] ss:$28 sps:$4 sm:$0xff]  }
 0x43a   :  { %4440 = vmatprep.subr.bf16.mxu0 %v6055_v47  ;;  %4522 = vmatprep.subr.bf16.mxu1 %v6058_v8  ;;  %v6125_v47 = vld [vmem:[%s8349_s9 + $0x690] ss:$28 sps:$4 sm:$0xff]   ;;  %v5440_v8 = vadd.f32 %v7798_v16, %v142_v39  ;;  %v6187_v39 = vld [vmem:[%s8349_s9 + $0x240] ss:$28 sps:$4 sm:$0xff]  }
 0x43b   :  { %v6134_v16 = vld [vmem:[%s8349_s9 + $0x6d0] ss:$28 sps:$4 sm:$0xff]  }
 0x43d   :  { %4441 = vmatpush1.bf16.msra.mxu0 %v6053_v48  ;;  %4523 = vmatpush1.bf16.msra.mxu1 %v6056_v49  ;;  %v6133_v48 = vld [vmem:[%s8349_s9 + $0x6cc] ss:$28 sps:$4 sm:$0xff]   ;;  %v6136_v49 = vld [vmem:[%s8349_s9 + $0x6d4] ss:$28 sps:$4 sm:$0xff]  }
 0x43e   :  { %4442 = vmatprep.subr.bf16.mxu0 %v6061_v50  ;;  %4524 = vmatprep.subr.bf16.mxu1 %v6064_v51  ;;  %v6131_v50 = vld [vmem:[%s8349_s9 + $0x6c8] ss:$28 sps:$4 sm:$0xff]   ;;  %v2944_v51 = vmax.f32 %v5440_v8, 0.0  ;;  %v6196_v8 = vld [vmem:[%s8349_s9 + $0x440] ss:$28 sps:$4 sm:$0xff]  }
 0x441   :  { %4443 = vmatpush1.bf16.msra.mxu0 %v6059_v53  ;;  %4525 = vmatpush1.bf16.msra.mxu1 %v6062_v55  ;;  %v6139_v53 = vld [vmem:[%s8349_s9 + $0x14] ss:$28 sps:$4 sm:$0xff]  }
 0x442   :  { %4444 = vmatprep.subr.bf16.mxu0 %v6067_v12  ;;  %4526 = vmatprep.subr.bf16.mxu1 %v6070_v58  ;;  %v6140_v55 = vld [vmem:[%s8349_s9 + $0x1d8] ss:$28 sps:$4 sm:$0xff]   ;;  %v6137_v12 = vld [vmem:[%s8349_s9 + $0x10] ss:$28 sps:$4 sm:$0xff]   ;;  %v8012_v58 = vpack.c.bf16 %v2944_v51, %v2944_v51 }
 0x443   :  { %v6204_v51 = vld [vmem:[%s8349_s9 + $0x2ec] ss:$28 sps:$4 sm:$0xff]  }
 0x445   :  { %4445 = vmatpush1.bf16.msra.mxu0 %v6065_v59  ;;  %4527 = vmatpush1.bf16.msra.mxu1 %v6068_v21  ;;  %v6141_v59 = vld [vmem:[%s8349_s9 + $0x18] ss:$28 sps:$4 sm:$0xff]   ;;  %v6144_v21 = vld [vmem:[%s8349_s9 + $0x4c] ss:$28 sps:$4 sm:$0xff]  }
 0x446   :  { %4446 = vmatprep.subr.bf16.mxu0 %v6073_v60  ;;  %4528 = vmatprep.subr.bf16.mxu1 %v6076_v18  ;;  %v6145_v60 = vld [vmem:[%s8349_s9 + $0x210] ss:$28 sps:$4 sm:$0xff]   ;;  %v6142_v18 = vld [vmem:[%s8349_s9 + $0x48] ss:$28 sps:$4 sm:$0xff]  }
 0x449   :  { %4447 = vmatpush1.bf16.msra.mxu0 %v6071_v62  ;;  %4529 = vmatpush1.bf16.msra.mxu1 %v6074_v63  ;;  %v6146_v62 = vld [vmem:[%s8349_s9 + $0x50] ss:$28 sps:$4 sm:$0xff]   ;;  %v6149_v63 = vld [vmem:[%s8349_s9 + $0x84] ss:$28 sps:$4 sm:$0xff]  }
 0x44a   :  { %4448 = vmatprep.subr.bf16.mxu0 %v6079_v0  ;;  %4530 = vmatprep.subr.bf16.mxu1 %v6082_v56  ;;  %v6150_v0 = vld [vmem:[%s8349_s9 + $0x248] ss:$28 sps:$4 sm:$0xff]   ;;  %v6147_v56 = vld [vmem:[%s8349_s9 + $0x80] ss:$28 sps:$4 sm:$0xff]  }
 0x44d   :  { %4449 = vmatpush1.bf16.msra.mxu0 %v6077_v52  ;;  %4531 = vmatpush1.bf16.msra.mxu1 %v6080_v1  ;;  %v6154_v52 = vld [vmem:[%s8349_s9 + $0xbc] ss:$28 sps:$4 sm:$0xff]  }
 0x44e   :  { %4450 = vmatprep.subr.bf16.mxu0 %v6085_v19  ;;  %4532 = vmatprep.subr.bf16.mxu1 %v6088_v2  ;;  %v6155_v1 = vld [vmem:[%s8349_s9 + $0x280] ss:$28 sps:$4 sm:$0xff]   ;;  %v6152_v19 = vld [vmem:[%s8349_s9 + $0xb8] ss:$28 sps:$4 sm:$0xff]  }
 0x44f   :  { %v6156_v2 = vld [vmem:[%s8349_s9 + $0xc0] ss:$28 sps:$4 sm:$0xff]  }
 0x451   :  { %4451 = vmatpush1.bf16.msra.mxu0 %v6083_v54  ;;  %4533 = vmatpush1.bf16.msra.mxu1 %v6086_v61  ;;  %v6159_v54 = vld [vmem:[%s8349_s9 + $0xf4] ss:$28 sps:$4 sm:$0xff]  }
 0x452   :  { %4452 = vmatprep.subr.bf16.mxu0 %v6091_v4  ;;  %4534 = vmatprep.subr.bf16.mxu1 %v6094_v57  ;;  %v6160_v61 = vld [vmem:[%s8349_s9 + $0x2b8] ss:$28 sps:$4 sm:$0xff]   ;;  %v6157_v4 = vld [vmem:[%s8349_s9 + $0xf0] ss:$28 sps:$4 sm:$0xff]  }
 0x453   :  { %v6161_v57 = vld [vmem:[%s8349_s9 + $0xf8] ss:$28 sps:$4 sm:$0xff]  }
 0x455   :  { %4453 = vmatpush1.bf16.msra.mxu0 %v6089_v5  ;;  %4535 = vmatpush1.bf16.msra.mxu1 %v6092_v6  ;;  %v6164_v5 = vld [vmem:[%s8349_s9 + $0x12c] ss:$28 sps:$4 sm:$0xff]  }
 0x456   :  { %4454 = vmatprep.subr.bf16.mxu0 %v6097_v7  ;;  %4536 = vmatprep.subr.bf16.mxu1 %v6100_v10  ;;  %v6165_v6 = vld [vmem:[%s8349_s9 + $0x2f0] ss:$28 sps:$4 sm:$0xff]   ;;  %v6162_v7 = vld [vmem:[%s8349_s9 + $0x128] ss:$28 sps:$4 sm:$0xff]  }
 0x457   :  { %v6166_v10 = vld [vmem:[%s8349_s9 + $0x130] ss:$28 sps:$4 sm:$0xff]  }
 0x459   :  { %4455 = vmatpush1.bf16.msra.mxu0 %v6095_v11  ;;  %4537 = vmatpush1.bf16.msra.mxu1 %v6098_v13  ;;  %v6169_v11 = vld [vmem:[%s8349_s9 + $0x164] ss:$28 sps:$4 sm:$0xff]  }
 0x45a   :  { %4456 = vmatprep.subr.bf16.mxu0 %v6103_v14  ;;  %4538 = vmatprep.subr.bf16.mxu1 %v6106_v15  ;;  %v6170_v13 = vld [vmem:[%s8349_s9 + $0x328] ss:$28 sps:$4 sm:$0xff]   ;;  %v6167_v14 = vld [vmem:[%s8349_s9 + $0x160] ss:$28 sps:$4 sm:$0xff]  }
 0x45b   :  { %v6171_v15 = vld [vmem:[%s8349_s9 + $0x168] ss:$28 sps:$4 sm:$0xff]  }
 0x45d   :  { %4457 = vmatpush1.bf16.msra.mxu0 %v6101_v22  ;;  %4539 = vmatpush1.bf16.msra.mxu1 %v6104_v23  ;;  %v6174_v22 = vld [vmem:[%s8349_s9 + $0x19c] ss:$28 sps:$4 sm:$0xff]  }
 0x45e   :  { %4458 = vmatprep.subr.bf16.mxu0 %v6109_v24  ;;  %4540 = vmatprep.subr.bf16.mxu1 %v6112_v25  ;;  %v6175_v23 = vld [vmem:[%s8349_s9 + $0x360] ss:$28 sps:$4 sm:$0xff]   ;;  %v6172_v24 = vld [vmem:[%s8349_s9 + $0x198] ss:$28 sps:$4 sm:$0xff]  }
 0x45f   :  { %v6176_v25 = vld [vmem:[%s8349_s9 + $0x1a0] ss:$28 sps:$4 sm:$0xff]  }
 0x461   :  { %4459 = vmatpush1.bf16.msra.mxu0 %v6107_v26  ;;  %4541 = vmatpush1.bf16.msra.mxu1 %v6110_v27  ;;  %v6179_v26 = vld [vmem:[%s8349_s9 + $0x1d4] ss:$28 sps:$4 sm:$0xff]  }
 0x462   :  { %4460 = vmatprep.subr.bf16.mxu0 %v6115_v28  ;;  %4542 = vmatprep.subr.bf16.mxu1 %v6118_v29  ;;  %v6180_v27 = vld [vmem:[%s8349_s9 + $0x558] ss:$28 sps:$4 sm:$0xff]   ;;  %v6177_v28 = vld [vmem:[%s8349_s9 + $0x1d0] ss:$28 sps:$4 sm:$0xff]  }
 0x463   :  { %v6181_v29 = vld [vmem:[%s8349_s9 + $0x398] ss:$28 sps:$4 sm:$0xff]  }
 0x465   :  { %4461 = vmatpush1.bf16.msra.mxu0 %v6113_v30  ;;  %4543 = vmatpush1.bf16.msra.mxu1 %v6116_v31  ;;  %v6184_v30 = vld [vmem:[%s8349_s9 + $0x20c] ss:$28 sps:$4 sm:$0xff]  }
 0x466   :  { %4462 = vmatprep.subr.bf16.mxu0 %v6121_v33  ;;  %4544 = vmatprep.subr.bf16.mxu1 %v6124_v35  ;;  %v6185_v31 = vld [vmem:[%s8349_s9 + $0x590] ss:$28 sps:$4 sm:$0xff]   ;;  %v6182_v33 = vld [vmem:[%s8349_s9 + $0x208] ss:$28 sps:$4 sm:$0xff]  }
 0x467   :  { %v6186_v35 = vld [vmem:[%s8349_s9 + $0x3d0] ss:$28 sps:$4 sm:$0xff]  }
 0x469   :  { %4463 = vmatpush1.bf16.msra.mxu0 %v6119_v36  ;;  %4545 = vmatpush1.bf16.msra.mxu1 %v6122_v38  ;;  %v6189_v36 = vld [vmem:[%s8349_s9 + $0x244] ss:$28 sps:$4 sm:$0xff]  }
 0x46a   :  { %4464 = vmatprep.subr.bf16.mxu0 %v6127_v41  ;;  %4546 = vmatprep.subr.bf16.mxu1 %v6130_v46  ;;  %v6190_v38 = vld [vmem:[%s8349_s9 + $0x5c8] ss:$28 sps:$4 sm:$0xff]   ;;  %v6194_v46 = vld [vmem:[%s8349_s9 + $0x27c] ss:$28 sps:$4 sm:$0xff]  }
 0x46b   :  { %v6191_v41 = vld [vmem:[%s8349_s9 + $0x408] ss:$28 sps:$4 sm:$0xff]  }
 0x46d   :  { %4465 = vmatpush1.bf16.msra.mxu0 %v6125_v47  ;;  %4547 = vmatpush1.bf16.msra.mxu1 %v6128_v44  ;;  %v6195_v47 = vld [vmem:[%s8349_s9 + $0x600] ss:$28 sps:$4 sm:$0xff]   ;;  %v6192_v44 = vld [vmem:[%s8349_s9 + $0x278] ss:$28 sps:$4 sm:$0xff]  }
 0x46e   :  { %4466 = vmatprep.subr.bf16.mxu0 %v6133_v48  ;;  %4548 = vmatprep.subr.bf16.mxu1 %v6136_v49  ;;  %v6199_v48 = vld [vmem:[%s8349_s9 + $0x2b4] ss:$28 sps:$4 sm:$0xff]  }
 0x46f   :  { %v6200_v49 = vld [vmem:[%s8349_s9 + $0x638] ss:$28 sps:$4 sm:$0xff]  }
 0x471   :  { %4467 = vmatpush1.bf16.msra.mxu0 %v6131_v50  ;;  %4549 = vmatpush1.bf16.msra.mxu1 %v6134_v16  ;;  %v6197_v50 = vld [vmem:[%s8349_s9 + $0x2b0] ss:$28 sps:$4 sm:$0xff]   ;;  %v6201_v16 = vld [vmem:[%s8349_s9 + $0x478] ss:$28 sps:$4 sm:$0xff]  }
 0x472   :  { %4559 = vmatprep.subr.bf16.mxu0 %v6139_v53  ;;  %5388 = vmatprep.subr.bf16.mxu1 %v6140_v55  ;;  %v6205_v53 = vld [vmem:[%s8349_s9 + $0x670] ss:$28 sps:$4 sm:$0xff]   ;;  %v6202_v55 = vld [vmem:[%s8349_s9 + $0x2e8] ss:$28 sps:$4 sm:$0xff]  }
 0x474   :  { %4469 = vmatmul.mubr.bf16.vlgmr.msra.gmra.mrb[12].mxu0 %v8012_v58  ;;  %4551 = vmatmul.mubr.bf16.vlgmr.msra.gmra.mrb[16].mxu1 %v8012_v58 }
 0x475   :  { %4560 = vmatpush1.bf16.msra.mxu0 %v6137_v12  ;;  %4591 = vmatprep.mubr.bf16.mxu0 %v7800_v34  ;;  %v6206_v12 = vld [vmem:[%s8349_s9 + $0x4b0] ss:$28 sps:$4 sm:$0xff]  }
 0x476   :  { %5389 = vmatpush3.bf16.msra.mxu1 %v6141_v59  ;;  %4673 = vmatprep.mubr.bf16.mxu1 %v7800_v34  ;;  %v6151_v34 = vld [vmem:[%s8349_s9 + $0x88] ss:$28 sps:$4 sm:$0xff]  }
 0x477   :  { %4561 = vmatprep.subr.bf16.mxu0 %v6144_v21  ;;  %5390 = vmatprep.subr.bf16.mxu1 %v6145_v60  ;;  %v6209_v59 = vld [vmem:[%s8349_s9 + $0x324] ss:$28 sps:$4 sm:$0xff]  }
 0x478   :  { %v6210_v21 = vld [vmem:[%s8349_s9 + $0x6a8] ss:$28 sps:$4 sm:$0xff]   ;;  %v6207_v60 = vld [vmem:[%s8349_s9 + $0x320] ss:$28 sps:$4 sm:$0xff]  }
 0x479   :  { %4562 = vmatpush1.bf16.msra.mxu0 %v6142_v18  ;;  %v6211_v18 = vld [vmem:[%s8349_s9 + $0x4e8] ss:$28 sps:$4 sm:$0xff]  }
 0x47a   :  { %5391 = vmatpush3.bf16.msra.mxu1 %v6146_v62  ;;  %4563 = vmatprep.subr.bf16.mxu0 %v6149_v63  ;;  %v6214_v62 = vld [vmem:[%s8349_s9 + $0x35c] ss:$28 sps:$4 sm:$0xff]  }
 0x47b   :  { %5392 = vmatprep.subr.bf16.mxu1 %v6150_v0  ;;  %v6215_v63 = vld [vmem:[%s8349_s9 + $0x6e0] ss:$28 sps:$4 sm:$0xff]   ;;  %v6212_v0 = vld [vmem:[%s8349_s9 + $0x358] ss:$28 sps:$4 sm:$0xff]  }
 0x47d   :  { %4564 = vmatpush1.bf16.msra.mxu0 %v6147_v56  ;;  %v6216_v56 = vld [vmem:[%s8349_s9 + $0x520] ss:$28 sps:$4 sm:$0xff]  }
 0x47e   :  { %5393 = vmatpush3.bf16.msra.mxu1 %v6151_v34  ;;  %4565 = vmatprep.subr.bf16.mxu0 %v6154_v52  ;;  %v6219_v34 = vld [vmem:[%s8349_s9 + $0x394] ss:$28 sps:$4 sm:$0xff]  }
 0x47f   :  { %5394 = vmatprep.subr.bf16.mxu1 %v6155_v1  ;;  %v6217_v52 = vld [vmem:[%s8349_s9 + $0x390] ss:$28 sps:$4 sm:$0xff]  }
 0x480   :  { %v6222_v1 = vld [vmem:[%s8349_s9 + $0x3cc] ss:$28 sps:$4 sm:$0xff]  }
 0x481   :  { %4566 = vmatpush1.bf16.msra.mxu0 %v6152_v19  ;;  %v6220_v19 = vld [vmem:[%s8349_s9 + $0x3c8] ss:$28 sps:$4 sm:$0xff]  }
 0x482   :  { %5395 = vmatpush3.bf16.msra.mxu1 %v6156_v2  ;;  %4567 = vmatprep.subr.bf16.mxu0 %v6159_v54  ;;  %v6225_v2 = vld [vmem:[%s8349_s9 + $0x404] ss:$28 sps:$4 sm:$0xff]  }
 0x483   :  { %5396 = vmatprep.subr.bf16.mxu1 %v6160_v61  ;;  %v6223_v54 = vld [vmem:[%s8349_s9 + $0x400] ss:$28 sps:$4 sm:$0xff]   ;;  %v6231_v61 = vld [vmem:[%s8349_s9 + $0x474] ss:$28 sps:$4 sm:$0xff]  }
 0x485   :  { %4568 = vmatpush1.bf16.msra.mxu0 %v6157_v4  ;;  %v6229_v4 = vld [vmem:[%s8349_s9 + $0x470] ss:$28 sps:$4 sm:$0xff]  }
 0x486   :  { %5397 = vmatpush3.bf16.msra.mxu1 %v6161_v57  ;;  %4569 = vmatprep.subr.bf16.mxu0 %v6164_v5  ;;  %v6234_v57 = vld [vmem:[%s8349_s9 + $0x4ac] ss:$28 sps:$4 sm:$0xff]  }
 0x487   :  { %5398 = vmatprep.subr.bf16.mxu1 %v6165_v6  ;;  %v6232_v5 = vld [vmem:[%s8349_s9 + $0x4a8] ss:$28 sps:$4 sm:$0xff]  }
 0x488   :  { %v6237_v6 = vld [vmem:[%s8349_s9 + $0x4e4] ss:$28 sps:$4 sm:$0xff]  }
 0x489   :  { %4570 = vmatpush1.bf16.msra.mxu0 %v6162_v7  ;;  %v6235_v7 = vld [vmem:[%s8349_s9 + $0x4e0] ss:$28 sps:$4 sm:$0xff]  }
 0x48a   :  { %5399 = vmatpush3.bf16.msra.mxu1 %v6166_v10  ;;  %4571 = vmatprep.subr.bf16.mxu0 %v6169_v11  ;;  %v6240_v10 = vld [vmem:[%s8349_s9 + $0x51c] ss:$28 sps:$4 sm:$0xff]  }
 0x48b   :  { %5400 = vmatprep.subr.bf16.mxu1 %v6170_v13  ;;  %v6238_v11 = vld [vmem:[%s8349_s9 + $0x518] ss:$28 sps:$4 sm:$0xff]  }
 0x48c   :  { %v6243_v13 = vld [vmem:[%s8349_s9 + $0x554] ss:$28 sps:$4 sm:$0xff]  }
 0x48d   :  { %4572 = vmatpush1.bf16.msra.mxu0 %v6167_v14  ;;  %v6241_v14 = vld [vmem:[%s8349_s9 + $0x550] ss:$28 sps:$4 sm:$0xff]  }
 0x48e   :  { %5401 = vmatpush3.bf16.msra.mxu1 %v6171_v15  ;;  %4573 = vmatprep.subr.bf16.mxu0 %v6174_v22  ;;  %v6246_v15 = vld [vmem:[%s8349_s9 + $0x58c] ss:$28 sps:$4 sm:$0xff]  }
 0x48f   :  { %5402 = vmatprep.subr.bf16.mxu1 %v6175_v23  ;;  %v6244_v22 = vld [vmem:[%s8349_s9 + $0x588] ss:$28 sps:$4 sm:$0xff]  }
 0x490   :  { %v6249_v23 = vld [vmem:[%s8349_s9 + $0x5c4] ss:$28 sps:$4 sm:$0xff]  }
 0x491   :  { %4574 = vmatpush1.bf16.msra.mxu0 %v6172_v24  ;;  %v6247_v24 = vld [vmem:[%s8349_s9 + $0x5c0] ss:$28 sps:$4 sm:$0xff]  }
 0x492   :  { %5403 = vmatpush3.bf16.msra.mxu1 %v6176_v25  ;;  %4575 = vmatprep.subr.bf16.mxu0 %v6179_v26  ;;  %v6252_v25 = vld [vmem:[%s8349_s9 + $0x5fc] ss:$28 sps:$4 sm:$0xff]  }
 0x493   :  { %5410 = vmatprep.subr.bf16.mxu1 %v6180_v27  ;;  %v6250_v26 = vld [vmem:[%s8349_s9 + $0x5f8] ss:$28 sps:$4 sm:$0xff]  }
 0x494   :  { %v6255_v27 = vld [vmem:[%s8349_s9 + $0x634] ss:$28 sps:$4 sm:$0xff]  }
 0x495   :  { %4674 = vmatmul.mubr.bf16.vlgmr.msra.gmra.mrb[20].mxu1 %v7808_v37  ;;  %4576 = vmatpush1.bf16.msra.mxu0 %v6177_v28  ;;  %v6253_v28 = vld [vmem:[%s8349_s9 + $0x630] ss:$28 sps:$4 sm:$0xff]  }
 0x496   :  { %5411 = vmatpush3.bf16.msra.mxu1 %v6181_v29  ;;  %4713 = vmatprep.mubr.bf16.mxu1 %v7818_v40  ;;  %v6258_v29 = vld [vmem:[%s8349_s9 + $0x66c] ss:$28 sps:$4 sm:$0xff]  }
 0x497   :  { %4577 = vmatprep.subr.bf16.mxu0 %v6184_v30  ;;  %5412 = vmatprep.subr.bf16.mxu1 %v6185_v31  ;;  %v6256_v30 = vld [vmem:[%s8349_s9 + $0x668] ss:$28 sps:$4 sm:$0xff]  }
 0x498   :  { %v6261_v31 = vld [vmem:[%s8349_s9 + $0x6a4] ss:$28 sps:$4 sm:$0xff]  }
 0x499   :  { %4578 = vmatpush1.bf16.msra.mxu0 %v6182_v33  ;;  %v6259_v33 = vld [vmem:[%s8349_s9 + $0x6a0] ss:$28 sps:$4 sm:$0xff]  }
 0x49a   :  { %5413 = vmatpush3.bf16.msra.mxu1 %v6186_v35  ;;  %4579 = vmatprep.subr.bf16.mxu0 %v6189_v36  ;;  %v6264_v35 = vld [vmem:[%s8349_s9 + $0x6dc] ss:$28 sps:$4 sm:$0xff]  }
 0x49b   :  { %5414 = vmatprep.subr.bf16.mxu1 %v6190_v38  ;;  %v6262_v36 = vld [vmem:[%s8349_s9 + $0x6d8] ss:$28 sps:$4 sm:$0xff]   ;;  %v8306_v38 = vld [vmem:[%s8350_s10] sm:$0x7f] }
 0x49d   :  { %4580 = vmatpush1.bf16.msra.mxu0 %v6187_v39  ;;  %v3211_v39 = vrot.slane %v8306_v38, %v7460_v43 }
 0x49e   :  { %5415 = vmatpush3.bf16.msra.mxu1 %v6191_v41  ;;  %4581 = vmatprep.subr.bf16.mxu0 %v6194_v46  ;;  %v3219_v41 = vrot.slane %v8306_v38, %v125_v20  ;;  %v3215_v46 = vrot.slane %v8306_v38, %v7468_v45 }
 0x49f   :  { %5416 = vmatprep.subr.bf16.mxu1 %v6195_v47  ;;  %v3223_v47 = vrot.slane %v8306_v38, %v129_v17 }
 0x4a1   :  { %4582 = vmatpush1.bf16.msra.mxu0 %v6192_v44 }
 0x4a2   :  { %5417 = vmatpush3.bf16.msra.mxu1 %v6196_v8  ;;  %4583 = vmatprep.subr.bf16.mxu0 %v6199_v48 }
 0x4a3   :  { %5418 = vmatprep.subr.bf16.mxu1 %v6200_v49 }
 0x4a5   :  { %4584 = vmatpush1.bf16.msra.mxu0 %v6197_v50 }
 0x4a6   :  { %5419 = vmatpush3.bf16.msra.mxu1 %v6201_v16  ;;  %4585 = vmatprep.subr.bf16.mxu0 %v6204_v51 }
 0x4a7   :  { %5420 = vmatprep.subr.bf16.mxu1 %v6205_v53 }
 0x4a9   :  { %4586 = vmatpush1.bf16.msra.mxu0 %v6202_v55 }
 0x4aa   :  { %5421 = vmatpush3.bf16.msra.mxu1 %v6206_v12  ;;  %4587 = vmatprep.subr.bf16.mxu0 %v6209_v59 }
 0x4ab   :  { %5422 = vmatprep.subr.bf16.mxu1 %v6210_v21 }
 0x4ad   :  { %4588 = vmatpush1.bf16.msra.mxu0 %v6207_v60 }
 0x4ae   :  { %5423 = vmatpush3.bf16.msra.mxu1 %v6211_v18  ;;  %4589 = vmatprep.subr.bf16.mxu0 %v6214_v62 }
 0x4af   :  { %5424 = vmatprep.subr.bf16.mxu1 %v6215_v63 }
 0x4b1   :  { %4590 = vmatpush1.bf16.msra.mxu0 %v6212_v0 }
 0x4b2   :  { %5425 = vmatpush3.bf16.msra.mxu1 %v6216_v56  ;;  %4600 = vmatprep.subr.bf16.mxu0 %v6219_v34 }
 0x4b4   :  { %4592 = vmatmul.mubr.bf16.vlgmr.msra.gmra.mrb[16].mxu0 %v7808_v37  ;;  %v6228_v37 = vld [vmem:[%s8349_s9 + $0x43c] ss:$28 sps:$4 sm:$0xff]  }
 0x4b5   :  { %4714 = vmatmul.mubr.bf16.vlgmr.msra.gmra.mrb[24].mxu1 %v8012_v58  ;;  %4601 = vmatpush1.bf16.msra.mxu0 %v6217_v52 }
 0x4b6   :  { %4632 = vmatprep.mubr.bf16.mxu0 %v7818_v40  ;;  %4602 = vmatprep.subr.bf16.mxu0 %v6222_v1  ;;  %v6226_v40 = vld [vmem:[%s8349_s9 + $0x438] ss:$28 sps:$4 sm:$0xff]   ;;  %s6321_s9 = smov [#allocation2]  }
 0x4b7   :  { %s4776_s10 = sshll.u32 %s6321_s9, 4  ;;  %s4777_s10 = int_to_ptr.vmem [resolvable:$true] %s4776_s10 }
 0x4b8   :  { %s6295_s18 = scalar_lea.vmem %s4777_s10, 896  ;;  %p6300_p1 = scmp.lt.s32.totalorder %s4777_s10, %s4777_s10 }
 0x4b9   :  { %4603 = vmatpush1.bf16.msra.mxu0 %v6220_v19  ;;  %p6296_p0 = scmp.ne.s32.totalorder %s4777_s10, %s6295_s18  ;;  %p6301_p2 = scmp.lt.s32.totalorder %s6295_s18, %s6295_s18 }
 0x4ba   :  { %4604 = vmatprep.subr.bf16.mxu0 %v6225_v2 }
 0x4bb   :  { %p6302_p3 = por %p6301_p2, %p6300_p1 }
 0x4bd   :  { %4605 = vmatpush1.bf16.msra.mxu0 %v6223_v54  ;;  %p6303_p4 = pnand %p6302_p3, %p6296_p0 }
 0x4be   :  { %4606 = vmatprep.subr.bf16.mxu0 %v6228_v37 }
 0x4c1   :  { %4607 = vmatpush1.bf16.msra.mxu0 %v6226_v40 }
 0x4c2   :  { %4608 = vmatprep.subr.bf16.mxu0 %v6231_v61 }
 0x4c5   :  { %4609 = vmatpush1.bf16.msra.mxu0 %v6229_v4 }
 0x4c6   :  { %4610 = vmatprep.subr.bf16.mxu0 %v6234_v57  ;;  %v3235_v57 = vrot.slane %v8306_v38, %v141_v32  ;;  %v3231_v32 = vrot.slane %v8306_v38, %v137_v9 }
 0x4c9   :  { %4611 = vmatpush1.bf16.msra.mxu0 %v6232_v5 }
 0x4ca   :  { %4612 = vmatprep.subr.bf16.mxu0 %v6237_v6 }
 0x4cd   :  { %4613 = vmatpush1.bf16.msra.mxu0 %v6235_v7 }
 0x4ce   :  { %4614 = vmatprep.subr.bf16.mxu0 %v6240_v10 }
 0x4d1   :  { %4615 = vmatpush1.bf16.msra.mxu0 %v6238_v11 }
 0x4d2   :  { %4616 = vmatprep.subr.bf16.mxu0 %v6243_v13 }
 0x4d5   :  { %4617 = vmatpush1.bf16.msra.mxu0 %v6241_v14 }
 0x4d6   :  { %4618 = vmatprep.subr.bf16.mxu0 %v6246_v15 }
 0x4d9   :  { %4619 = vmatpush1.bf16.msra.mxu0 %v6244_v22 }
 0x4da   :  { %4620 = vmatprep.subr.bf16.mxu0 %v6249_v23 }
 0x4dd   :  { %4621 = vmatpush1.bf16.msra.mxu0 %v6247_v24 }
 0x4de   :  { %4622 = vmatprep.subr.bf16.mxu0 %v6252_v25  ;;  %v3227_v25 = vrot.slane %v8306_v38, %v133_v3 }
 0x4e1   :  { %4623 = vmatpush1.bf16.msra.mxu0 %v6250_v26 }
 0x4e2   :  { %4624 = vmatprep.subr.bf16.mxu0 %v6255_v27 }
 0x4e5   :  { %4625 = vmatpush1.bf16.msra.mxu0 %v6253_v28 }
 0x4e6   :  { %4626 = vmatprep.subr.bf16.mxu0 %v6258_v29 }
 0x4e9   :  { %4627 = vmatpush1.bf16.msra.mxu0 %v6256_v30 }
 0x4ea   :  { %4628 = vmatprep.subr.bf16.mxu0 %v6261_v31 }
 0x4ed   :  { %4629 = vmatpush1.bf16.msra.mxu0 %v6259_v33 }
 0x4ee   :  { %4630 = vmatprep.subr.bf16.mxu0 %v6264_v35 }
 0x4f1   :  { %4631 = vmatpush1.bf16.msra.mxu0 %v6262_v36 }
 0x4f4   :  { %4633 = vmatmul.mubr.bf16.vlgmr.msra.gmra.mrb[16].mxu0 %v8012_v58 }
 0x547   :  { %v4470_v58 = vpop.f32.mrb[12].mxu0  ;;  %v4552_v44 = vpop.f32.mrb[16].mxu1 }
 0x548   :  { %v5442_v8 = vadd.f32 %v4470_v58, %v3211_v39  ;;  %v5444_v48 = vadd.f32 %v4552_v44, %v3219_v41  ;;  %v4472_v49 = vpop.f32.mrb[13].mxu0  ;;  %v4554_v50 = vpop.f32.mrb[17].mxu1 }
 0x549   :  { %v5443_v16 = vadd.f32 %v4472_v49, %v3215_v46  ;;  %v5445_v51 = vadd.f32 %v4554_v50, %v3223_v47  ;;  %v4474_v43 = vpop.f32.mrb[14].mxu0  ;;  %v4556_v53 = vpop.f32.mrb[18].mxu1 }
 0x54a   :  { %v5381_v55 = vmul.f32 -1.442695, %v5442_v8  ;;  %v5383_v12 = vmul.f32 -1.442695, %v5444_v48  ;;  %v4475_v20 = vpop.f32.mrb[15].mxu0  ;;  %v4557_v59 = vpop.f32.mrb[19].mxu1 }
 0x54b   :  { %v5382_v21 = vmul.f32 -1.442695, %v5443_v16  ;;  %v5384_v45 = vmul.f32 -1.442695, %v5445_v51 }
 0x54c   :  { %6267 = vpow2.f32 %v5381_v55 }
 0x54d   :  { %6269 = vpow2.f32 %v5383_v12 }
 0x54e   :  { %6271 = vpow2.f32 %v5382_v21 }
 0x54f   :  { %6273 = vpow2.f32 %v5384_v45 }
 0x556   :  { %v6268_v17 = vpop.eup %6267 }
 0x557   :  { %v6270_v60 = vpop.eup %6269  ;;  %v4742_v18 = vadd.f32 1.0, %v6268_v17 }
 0x558   :  { %v6272_v62 = vpop.eup %6271  ;;  %v4744_v63 = vadd.f32 1.0, %v6270_v60 }
 0x559   :  { %v6274_v0 = vpop.eup %6273  ;;  %6275 = vrcp.f32 %v4742_v18  ;;  %v4743_v56 = vadd.f32 1.0, %v6272_v62 }
 0x55a   :  { %6277 = vrcp.f32 %v4744_v63  ;;  %v4745_v34 = vadd.f32 1.0, %v6274_v0 }
 0x55b   :  { %6279 = vrcp.f32 %v4743_v56 }
 0x55c   :  { %6281 = vrcp.f32 %v4745_v34 }
 0x563   :  { %v6276_v52 = vpop.eup %6275 }
 0x564   :  { %v6278_v1 = vpop.eup %6277  ;;  %4763 = vst [vmem:[#allocation2] sm:$0xff] %v6276_v52 }
 0x565   :  { %v6280_v19 = vpop.eup %6279  ;;  %4765 = vst [vmem:[#allocation2 + $0x10] sm:$0xff] %v6278_v1 }
 0x566   :  { %v6282_v2 = vpop.eup %6281  ;;  %4764 = vst [vmem:[#allocation2 + $0x8] sm:$0xff] %v6280_v19 }
 0x567   :  { %4766 = vst [vmem:[#allocation2 + $0x18] sm:$0xff] %v6282_v2 }
 0x568   :  { %v5404_v54 = vpop.f32.mrb[20].mxu1 }
 0x569   :  { %v5405_v37 = vpop.f32.mrb[21].mxu1 }
 0x56a   :  { %v5406_v40 = vadd.f32 %v5405_v37, %v5404_v54  ;;  %v5407_v61 = vpop.f32.mrb[22].mxu1 }
 0x56b   :  { %v5408_v4 = vpop.f32.mrb[23].mxu1 }
 0x56c   :  { %v4676_v7 = vadd.f32 %v5406_v40, %v3235_v57 }
 0x588   :  { %v5426_v5 = vpop.f32.mrb[24].mxu1 }
 0x589   :  { %v5427_v6 = vpop.f32.mrb[25].mxu1 }
 0x58a   :  { %v5428_v10 = vadd.f32 %v5427_v6, %v5426_v5  ;;  %v5429_v11 = vpop.f32.mrb[26].mxu1 }
 0x58b   :  { %v5430_v13 = vpop.f32.mrb[27].mxu1 }
 0x58c   :  { %v4716_v14 = vadd.f32 %v5428_v10, %v4676_v7 }
 0x58e   :  { %v5387_v15 = vmul.f32 -1.442695, %v4716_v14 }
 0x590   :  { %6283 = vpow2.f32 %v5387_v15 }
 0x59a   :  { %v6284_v22 = vpop.eup %6283 }
 0x59b   :  { %v4748_v23 = vadd.f32 1.0, %v6284_v22 }
 0x59d   :  { %6285 = vrcp.f32 %v4748_v23 }
 0x5a7   :  { %v6286_v24 = vpop.eup %6285 }
 0x5a8   :  { %4769 = vst.msk [vmem:[#allocation2 + $0x30] sm:$0xff] %vm1843_vm2, %v6286_v24 }
 0x5c7   :  { %v4634_v26 = vpop.f32.mrb[16].mxu0 }
 0x5c8   :  { %v5446_v27 = vadd.f32 %v4634_v26, %v3227_v25  ;;  %v4636_v28 = vpop.f32.mrb[17].mxu0 }
 0x5c9   :  { %v5447_v29 = vadd.f32 %v4636_v28, %v3231_v32  ;;  %v4638_v30 = vpop.f32.mrb[18].mxu0 }
 0x5ca   :  { %v5385_v31 = vmul.f32 -1.442695, %v5446_v27  ;;  %v4639_v33 = vpop.f32.mrb[19].mxu0 }
 0x5cb   :  { %v5386_v35 = vmul.f32 -1.442695, %v5447_v29 }
 0x5cc   :  { %6287 = vpow2.f32 %v5385_v31 }
 0x5cd   :  { %6289 = vpow2.f32 %v5386_v35 }
 0x5d6   :  { %v6288_v36 = vpop.eup %6287 }
 0x5d7   :  { %v6290_v39 = vpop.eup %6289  ;;  %v4746_v41 = vadd.f32 1.0, %v6288_v36 }
 0x5d8   :  { %v4747_v46 = vadd.f32 1.0, %v6290_v39 }
 0x5d9   :  { %6291 = vrcp.f32 %v4746_v41 }
 0x5da   :  { %6293 = vrcp.f32 %v4747_v46 }
 0x5e3   :  { %v6292_v42 = vpop.eup %6291 }
 0x5e4   :  { %v6294_v3 = vpop.eup %6293  ;;  %4767 = vst [vmem:[#allocation2 + $0x20] sm:$0xff] %v6292_v42 }
 0x5e5   :  { %4768 = vst [vmem:[#allocation2 + $0x28] sm:$0xff] %v6294_v3 }
 0x5e6   :  { %6306 = shalt.err (!%p6303_p4)
}
 0x5e7   :  { %s6307_s20 = scalar_lea.hbm %s8351_s11, 896 }
 0x5e8   :  { %p6308_p5 = scmp.ne.s32.totalorder %s8351_s11, %s6307_s20  ;;  %p6311_p6 = scmp.lt.u32.totalorder %s6307_s20, %s8351_s11 }
 0x5ea   :  { %p6313_p7 = pnand %p6311_p6, %p6308_p5 }
 0x5ec   :  { %6316 = shalt.err (!%p6313_p7)
}
 0x5ed   :  { %4779 = dma.vmem_to_hbm [thread:$0]  %s4777_s10, 896, %s8351_s11, [#allocation3]  }
 0x5ee   :  { %6317 = dma.done.wait [#allocation3], 896  }
 0x5ef   :  { %6318 = vsyncadd [#allocation3], 4294966400 }
 0x5f0   :  { %4783 = vsyncpa [#allocation3], 1 }

</bundles_post_ra>
